<compile_context>
chip_gen: v6e
topology: v6e:2x2x1
jax: 0.10.0
libtpu: 0.0.40
codegen_flags: <defaults>
</compile_context>

<pallas_src>
import functools
import math

import jax
import jax.numpy as jnp
from jax.experimental import pallas as pl
from jax.experimental.pallas import tpu as pltpu


# ----------------------------- kernel helpers ------------------------------

def _new_gelu(x):
    # NewGELUActivation: 0.5*x*(1+tanh(sqrt(2/pi)*(x+0.044715*x^3)))
    c = math.sqrt(2.0 / math.pi)
    return 0.5 * x * (1.0 + jnp.tanh(c * (x + 0.044715 * x * x * x)))


def _layernorm(x, w, b, eps=1e-5):
    # TODO(synk): expose eps if topoformer config uses layer_norm_eps != 1e-5.
    mu = jnp.mean(x, axis=-1, keepdims=True)
    var = jnp.mean((x - mu) ** 2, axis=-1, keepdims=True)
    return (x - mu) * jax.lax.rsqrt(var + eps) * w + b


# --------------------------- fused encoder kernel ---------------------------
# One grid step = (one batch block of images, one transformer layer).

def encoder_block_kernel(num_heads,
                         x_ref,
                         ln1_w_ref, ln1_b_ref,
                         wqkv_ref, bqkv_ref,
                         wo_ref, bo_ref,
                         ln2_w_ref, ln2_b_ref,
                         w1_ref, b1_ref,
                         w2_ref, b2_ref,
                         out_ref):
    layer = pl.program_id(1)
    Bt, S, H = out_ref.shape
    dh = H // num_heads

    # Seed the resident residual stream (lives in the output VMEM block) from
    # the input only on the first layer; later layers carry it across steps.
    @pl.when(layer == 0)
    def _seed():
        out_ref[...] = x_ref[...]

    x3 = out_ref[...]                                   # (Bt, S, H) f32
    x2 = x3.reshape(Bt * S, H)                          # free leading-dim merge

    # ---- attention branch: LN1 -> fused QKV -> MHA -> out-proj -> residual
    y = _layernorm(x2, ln1_w_ref[...], ln1_b_ref[...])
    # 1/sqrt(dh) is already folded into the Q columns of wqkv / bqkv.
    qkv = jnp.dot(y.astype(jnp.bfloat16), wqkv_ref[...],
                  preferred_element_type=jnp.float32) + bqkv_ref[...]   # (Bt*S, 3H) f32
    q = qkv[:, 0:H]
    k = qkv[:, H:2 * H]
    v = qkv[:, 2 * H:3 * H]

    def heads(t2d):
        # (Bt*S, H) -> (Bt*num_heads, S, dh): lane slices + leading-axis concat,
        # then a free leading-dim reshape.
        parts = [t2d[:, h * dh:(h + 1) * dh].reshape(Bt, 1, S, dh)
                 for h in range(num_heads)]
        return jnp.concatenate(parts, axis=1).reshape(Bt * num_heads, S, dh)

    qh = heads(q).astype(jnp.bfloat16)                  # bf16 MXU operands
    kh = heads(k).astype(jnp.bfloat16)
    vh = heads(v).astype(jnp.bfloat16)

    scores = jnp.einsum('gqd,gkd->gqk', qh, kh,
                        preferred_element_type=jnp.float32)   # (Bt*nh, S, S) f32
    scores = scores - jnp.max(scores, axis=-1, keepdims=True)
    e = jnp.exp(scores)
    inv_denom = pl.reciprocal(jnp.sum(e, axis=-1, keepdims=True), approx=True)
    probs = (e * inv_denom).astype(jnp.bfloat16)
    ctx = jnp.einsum('gqk,gkd->gqd', probs, vh,
                     preferred_element_type=jnp.float32)      # (Bt*nh, S, dh) f32

    # Merge heads back to (Bt*S, H) and do ONE full-K output projection.
    ctx4 = ctx.reshape(Bt, num_heads, S, dh)
    merged = jnp.concatenate(
        [ctx4[:, h].reshape(Bt * S, dh) for h in range(num_heads)], axis=-1)
    attn = jnp.dot(merged.astype(jnp.bfloat16), wo_ref[...],
                   preferred_element_type=jnp.float32) + bo_ref[...]    # (Bt*S, H)
    # dropout with p=0.0 is an exact identity
    x1 = x2 + attn

    # ---- MLP branch: LN2 -> dense1 -> NewGELU -> dense2 -> residual
    y2 = _layernorm(x1, ln2_w_ref[...], ln2_b_ref[...])
    h1 = jnp.dot(y2.astype(jnp.bfloat16), w1_ref[...],
                 preferred_element_type=jnp.float32) + b1_ref[...]      # (Bt*S, I)
    h1 = _new_gelu(h1)
    m = jnp.dot(h1.astype(jnp.bfloat16), w2_ref[...],
                preferred_element_type=jnp.float32) + b2_ref[...]       # (Bt*S, H)

    out_ref[...] = (x1 + m).reshape(Bt, S, H)


# ------------------------------- wrapper ------------------------------------

def encoder_forward(x, stacked, num_heads, *, batch_block=None):
    """Encoder.forward: returns (x, None) like the PyTorch module."""
    B, S, H = x.shape
    L = stacked['wqkv'].shape[0]
    I = stacked['w1'].shape[2]
    dh = H // num_heads

    if batch_block is None:
        # Amortize the per-layer weight stream over several images per step,
        # but keep >= 2 batch blocks so megacore / v7x's 2nd TC gets work.
        batch_block = max(1, min(4, B // 2))
    while B % batch_block != 0:
        batch_block -= 1
    Bt = batch_block
    nb = B // Bt

    def wspec(*shape):
        zeros = (0,) * len(shape)
        # leading layer dim squeezed out of the kernel view
        return pl.BlockSpec((None,) + shape, lambda b, l, zeros=zeros: (l,) + zeros)

    in_specs = [
        pl.BlockSpec((Bt, S, H), lambda b, l: (b, 0, 0)),    # x (one batch block)
        wspec(1, H), wspec(1, H),                            # ln1 gamma/beta
        wspec(H, 3 * H), wspec(1, 3 * H),                    # fused QKV (scale folded)
        wspec(H, H), wspec(1, H),                            # out projection
        wspec(1, H), wspec(1, H),                            # ln2 gamma/beta
        wspec(H, I), wspec(1, I),                            # mlp dense_1
        wspec(I, H), wspec(1, H),                            # mlp dense_2
    ]
    out_spec = pl.BlockSpec((Bt, S, H), lambda b, l: (b, 0, 0))

    # Advisory cost estimate for the XLA scheduler.
    per_token_flops = 2 * H * 3 * H + 4 * S * H + 2 * H * H + 4 * H * I
    flops = int(L * B * S * per_token_flops)
    transcendentals = int(L * (B * num_heads * S * S + B * S * I))
    weight_bytes = sum(int(v.size) * v.dtype.itemsize for v in stacked.values())
    bytes_accessed = int(2 * B * S * H * 4 + nb * weight_bytes)  # weights per block

    kernel = functools.partial(encoder_block_kernel, num_heads)

    out = pl.pallas_call(
        kernel,
        out_shape=jax.ShapeDtypeStruct((B, S, H), jnp.float32),
        grid=(nb, L),                                        # (batch blocks, layers)
        in_specs=in_specs,
        out_specs=out_spec,
        compiler_params=pltpu.CompilerParams(
            dimension_semantics=("parallel", "arbitrary"),
            vmem_limit_bytes=64 * 1024 * 1024),
        cost_estimate=pl.CostEstimate(flops=flops,
                                      transcendentals=transcendentals,
                                      bytes_accessed=bytes_accessed),
    )(x,
      stacked['ln1_w'], stacked['ln1_b'],
      stacked['wqkv'], stacked['bqkv'],
      stacked['wo'], stacked['bo'],
      stacked['ln2_w'], stacked['ln2_b'],
      stacked['w1'], stacked['b1'],
      stacked['w2'], stacked['b2'])
    return out, None


# ------------------------- parameter initialization -------------------------

def init_params(key, num_layers, H, I):
    """Deterministic synthetic parameters (PyTorch nn.Linear is x @ W.T + b;
    weights are stored already transposed to (in, out) orientation)."""
    params = []
    for _ in range(num_layers):
        keys = jax.random.split(key, 7)
        key = keys[0]

        def w(k, shape):
            return (0.02 * jax.random.normal(k, shape)).astype(jnp.float32)

        p = dict(
            ln1_w=jnp.ones((H,), jnp.float32), ln1_b=jnp.zeros((H,), jnp.float32),
            wq=w(keys[1], (H, H)), bq=jnp.zeros((H,), jnp.float32),
            wk=w(keys[2], (H, H)), bk=jnp.zeros((H,), jnp.float32),
            wv=w(keys[3], (H, H)), bv=jnp.zeros((H,), jnp.float32),
            wo=w(keys[4], (H, H)), bo=jnp.zeros((H,), jnp.float32),
            ln2_w=jnp.ones((H,), jnp.float32), ln2_b=jnp.zeros((H,), jnp.float32),
            w1=w(keys[5], (H, I)), b1=jnp.zeros((I,), jnp.float32),
            w2=w(keys[6], (I, H)), b2=jnp.zeros((H,), jnp.float32),
        )
        params.append(p)
    return params


def stack_params(params, num_heads):
    """Stack per-layer params on a leading L axis in the layout the fused
    kernel expects: bf16 matmul weights, (1, .) f32 bias rows, fused QKV with
    1/sqrt(dh) folded into the Q columns, Wo kept as a full (H, H) matrix."""
    H = params[0]['wq'].shape[0]
    dh = H // num_heads
    scale = 1.0 / math.sqrt(dh)

    def get(name):
        return jnp.stack([p[name] for p in params], axis=0)

    wqkv = jnp.concatenate([get('wq') * scale, get('wk'), get('wv')], axis=-1)  # (L,H,3H)
    bqkv = jnp.concatenate([get('bq') * scale, get('bk'), get('bv')], axis=-1)  # (L,3H)
    return dict(
        ln1_w=get('ln1_w')[:, None, :], ln1_b=get('ln1_b')[:, None, :],
        wqkv=wqkv.astype(jnp.bfloat16), bqkv=bqkv[:, None, :],
        wo=get('wo').astype(jnp.bfloat16), bo=get('bo')[:, None, :],
        ln2_w=get('ln2_w')[:, None, :], ln2_b=get('ln2_b')[:, None, :],
        w1=get('w1').astype(jnp.bfloat16), b1=get('b1')[:, None, :],
        w2=get('w2').astype(jnp.bfloat16), b2=get('b2')[:, None, :],
    )


# ------------------------------ pure-JAX reference ---------------------------

def _ref_block(x, p, num_heads):
    B, S, H = x.shape
    dh = H // num_heads
    y = _layernorm(x, p['ln1_w'], p['ln1_b'])
    q = y @ p['wq'] + p['bq']
    k = y @ p['wk'] + p['bk']
    v = y @ p['wv'] + p['bv']
    qh = q.reshape(B, S, num_heads, dh).transpose(0, 2, 1, 3)
    kh = k.reshape(B, S, num_heads, dh).transpose(0, 2, 1, 3)
    vh = v.reshape(B, S, num_heads, dh).transpose(0, 2, 1, 3)
    scores = jnp.einsum('bhqd,bhkd->bhqk', qh, kh) / math.sqrt(dh)
    probs = jax.nn.softmax(scores, axis=-1)
    ctx = jnp.einsum('bhqk,bhkd->bhqd', probs, vh).transpose(0, 2, 1, 3).reshape(B, S, H)
    x = x + ctx @ p['wo'] + p['bo']
    y2 = _layernorm(x, p['ln2_w'], p['ln2_b'])
    m = _new_gelu(y2 @ p['w1'] + p['b1']) @ p['w2'] + p['b2']
    return x + m


def encoder_ref(x, params, num_heads):
    for p in params:
        x = _ref_block(x, p, num_heads)
    return x


# ----------------------------------- main ------------------------------------

if __name__ == "__main__":
    # config: hidden_size=32, intermediate_size=128 (4x), num_attention_heads=4,
    # num_hidden_layers=2, hidden_dropout_prob=0.0
    B, S, H, I = 4, 8, 32, 128
    NUM_HEADS = 4
    NUM_LAYERS = 2

    key = jax.random.PRNGKey(0)
    kx, kp = jax.random.split(key)
    x = jax.random.normal(kx, (B, S, H), dtype=jnp.float32)
    params = init_params(kp, NUM_LAYERS, H, I)
    stacked = stack_params(params, NUM_HEADS)

    out, attns = encoder_forward(x, stacked, NUM_HEADS)   # batch_block defaults to 2
    out = jax.block_until_ready(out)

    ref = encoder_ref(x, params, NUM_HEADS)
    assert out.shape == (B, S, H)
    assert attns is None
    # Tolerance covers bf16 MXU inputs + approx softmax reciprocal vs the
    # pure-f32 reference (observed error is O(1e-3) at these scales).
    assert jnp.allclose(out, ref, atol=1e-2, rtol=1e-2), "mismatch vs pure-JAX reference"

    print("KERNEL_OK")
</pallas_src>

<mosaic_0001>
module attributes {stable_mosaic.version = 11 : i64} {
  func.func @encoder_block_kernel(%arg0: i32, %arg1: i32, %arg2: memref<2x8x32xf32, #tpu.memory_space<vmem>>, %arg3: memref<1x1x32xf32, #tpu.memory_space<vmem>>, %arg4: memref<1x1x32xf32, #tpu.memory_space<vmem>>, %arg5: memref<1x32x96xbf16, #tpu.memory_space<vmem>>, %arg6: memref<1x1x96xf32, #tpu.memory_space<vmem>>, %arg7: memref<1x32x32xbf16, #tpu.memory_space<vmem>>, %arg8: memref<1x1x32xf32, #tpu.memory_space<vmem>>, %arg9: memref<1x1x32xf32, #tpu.memory_space<vmem>>, %arg10: memref<1x1x32xf32, #tpu.memory_space<vmem>>, %arg11: memref<1x32x128xbf16, #tpu.memory_space<vmem>>, %arg12: memref<1x1x128xf32, #tpu.memory_space<vmem>>, %arg13: memref<1x128x32xbf16, #tpu.memory_space<vmem>>, %arg14: memref<1x1x32xf32, #tpu.memory_space<vmem>>, %arg15: memref<2x8x32xf32, #tpu.memory_space<vmem>>) attributes {dimension_semantics = [#tpu.dimension_semantics<parallel>, #tpu.dimension_semantics<arbitrary>], iteration_bounds = array<i64: 2, 2>, scalar_prefetch = 0 : i64, scratch_operands = 0 : i64, tpu.core_type = #tpu.core_type<tc>, window_params = [{transform_indices = @transform_0, window_bounds = array<i64: 2, 8, 32>}, {transform_indices = @transform_1, window_bounds = array<i64: 1, 1, 32>}, {transform_indices = @transform_2, window_bounds = array<i64: 1, 1, 32>}, {transform_indices = @transform_3, window_bounds = array<i64: 1, 32, 96>}, {transform_indices = @transform_4, window_bounds = array<i64: 1, 1, 96>}, {transform_indices = @transform_5, window_bounds = array<i64: 1, 32, 32>}, {transform_indices = @transform_6, window_bounds = array<i64: 1, 1, 32>}, {transform_indices = @transform_7, window_bounds = array<i64: 1, 1, 32>}, {transform_indices = @transform_8, window_bounds = array<i64: 1, 1, 32>}, {transform_indices = @transform_9, window_bounds = array<i64: 1, 32, 128>}, {transform_indices = @transform_10, window_bounds = array<i64: 1, 1, 128>}, {transform_indices = @transform_11, window_bounds = array<i64: 1, 128, 32>}, {transform_indices = @transform_12, window_bounds = array<i64: 1, 1, 32>}, {transform_indices = @transform_13, window_bounds = array<i64: 2, 8, 32>}]} {
    %c0_i32 = arith.constant 0 : i32
    %0 = arith.cmpi eq, %arg1, %c0_i32 : i32
    %1 = arith.extui %0 : i1 to i32
    %c0_i32_0 = arith.constant 0 : i32
    %2 = arith.cmpi ne, %1, %c0_i32_0 : i32
    scf.if %2 {
      %c0_63 = arith.constant 0 : index
      %c0_64 = arith.constant 0 : index
      %c0_65 = arith.constant 0 : index
      %169 = vector.load %arg2[%c0_63, %c0_64, %c0_65] : memref<2x8x32xf32, #tpu.memory_space<vmem>>, vector<2x8x32xf32>
      %c0_66 = arith.constant 0 : index
      %c0_67 = arith.constant 0 : index
      %c0_68 = arith.constant 0 : index
      %170 = vector.load %arg15[%c0_66, %c0_67, %c0_68] : memref<2x8x32xf32, #tpu.memory_space<vmem>>, vector<2x8x32xf32>
      tpu.vector_store %arg15[%c0_66, %c0_67, %c0_68], %169 {strides = array<i32>} : memref<2x8x32xf32, #tpu.memory_space<vmem>>, vector<2x8x32xf32>,
    } else {
    }
    %c0 = arith.constant 0 : index
    %c0_1 = arith.constant 0 : index
    %c0_2 = arith.constant 0 : index
    %3 = vector.load %arg15[%c0, %c0_1, %c0_2] : memref<2x8x32xf32, #tpu.memory_space<vmem>>, vector<2x8x32xf32>
    %4 = vector.shape_cast %3 : vector<2x8x32xf32> to vector<16x32xf32>
    %c0_3 = arith.constant 0 : index
    %c0_4 = arith.constant 0 : index
    %c0_5 = arith.constant 0 : index
    %5 = vector.load %arg3[%c0_3, %c0_4, %c0_5] : memref<1x1x32xf32, #tpu.memory_space<vmem>>, vector<1x1x32xf32>
    %6 = vector.shape_cast %5 : vector<1x1x32xf32> to vector<1x32xf32>
    %c0_6 = arith.constant 0 : index
    %c0_7 = arith.constant 0 : index
    %c0_8 = arith.constant 0 : index
    %7 = vector.load %arg4[%c0_6, %c0_7, %c0_8] : memref<1x1x32xf32, #tpu.memory_space<vmem>>, vector<1x1x32xf32>
    %8 = vector.shape_cast %7 : vector<1x1x32xf32> to vector<1x32xf32>
    %cst = arith.constant dense<0.000000e+00> : vector<16xf32>
    %9 = vector.multi_reduction <add>, %4, %cst [1] : vector<16x32xf32> to vector<16xf32>
    %10 = vector.shape_cast %9 : vector<16xf32> to vector<16x1xf32>
    %cst_9 = arith.constant 3.200000e+01 : f32
    %11 = vector.broadcast %cst_9 : f32 to vector<16x1xf32>
    %12 = arith.divf %10, %11 : vector<16x1xf32>
    %13 = vector.broadcast %12 : vector<16x1xf32> to vector<16x32xf32>
    %14 = arith.subf %4, %13 : vector<16x32xf32>
    %15 = arith.mulf %14, %14 : vector<16x32xf32>
    %cst_10 = arith.constant dense<0.000000e+00> : vector<16xf32>
    %16 = vector.multi_reduction <add>, %15, %cst_10 [1] : vector<16x32xf32> to vector<16xf32>
    %17 = vector.shape_cast %16 : vector<16xf32> to vector<16x1xf32>
    %cst_11 = arith.constant 3.200000e+01 : f32
    %18 = vector.broadcast %cst_11 : f32 to vector<16x1xf32>
    %19 = arith.divf %17, %18 : vector<16x1xf32>
    %20 = vector.broadcast %12 : vector<16x1xf32> to vector<16x32xf32>
    %21 = arith.subf %4, %20 : vector<16x32xf32>
    %cst_12 = arith.constant 9.99999974E-6 : f32
    %22 = vector.broadcast %cst_12 : f32 to vector<16x1xf32>
    %23 = arith.addf %19, %22 : vector<16x1xf32>
    %24 = math.rsqrt %23 : vector<16x1xf32>
    %25 = vector.broadcast %24 : vector<16x1xf32> to vector<16x32xf32>
    %26 = arith.mulf %21, %25 : vector<16x32xf32>
    %27 = vector.broadcast %6 : vector<1x32xf32> to vector<16x32xf32>
    %28 = arith.mulf %26, %27 : vector<16x32xf32>
    %29 = vector.broadcast %8 : vector<1x32xf32> to vector<16x32xf32>
    %30 = arith.addf %28, %29 : vector<16x32xf32>
    %31 = arith.truncf %30 : vector<16x32xf32> to vector<16x32xbf16>
    %c0_13 = arith.constant 0 : index
    %c0_14 = arith.constant 0 : index
    %c0_15 = arith.constant 0 : index
    %32 = vector.load %arg5[%c0_13, %c0_14, %c0_15] : memref<1x32x96xbf16, #tpu.memory_space<vmem>>, vector<1x32x96xbf16>
    %33 = vector.shape_cast %32 : vector<1x32x96xbf16> to vector<32x96xbf16>
    %cst_16 = arith.constant dense<0.000000e+00> : vector<16x96xf32>
    %34 = tpu.matmul %31, %33, %cst_16 {dimension_numbers = #tpu.dot_dimension_numbers<[1], [0], [0], [1], [0, 0, 1, 1], [], []>} : vector<16x32xbf16>, vector<32x96xbf16>, vector<16x96xf32> -> vector<16x96xf32>
    %c0_17 = arith.constant 0 : index
    %c0_18 = arith.constant 0 : index
    %c0_19 = arith.constant 0 : index
    %35 = vector.load %arg6[%c0_17, %c0_18, %c0_19] : memref<1x1x96xf32, #tpu.memory_space<vmem>>, vector<1x1x96xf32>
    %36 = vector.shape_cast %35 : vector<1x1x96xf32> to vector<1x96xf32>
    %37 = vector.broadcast %36 : vector<1x96xf32> to vector<16x96xf32>
    %38 = arith.addf %34, %37 : vector<16x96xf32>
    %39 = vector.extract_strided_slice %38 {offsets = [0, 0], sizes = [16, 32], strides = [1, 1]} : vector<16x96xf32> to vector<16x32xf32>
    %40 = vector.extract_strided_slice %38 {offsets = [0, 32], sizes = [16, 32], strides = [1, 1]} : vector<16x96xf32> to vector<16x32xf32>
    %41 = vector.extract_strided_slice %38 {offsets = [0, 64], sizes = [16, 32], strides = [1, 1]} : vector<16x96xf32> to vector<16x32xf32>
    %42 = vector.extract_strided_slice %39 {offsets = [0, 0], sizes = [16, 8], strides = [1, 1]} : vector<16x32xf32> to vector<16x8xf32>
    %43 = vector.shape_cast %42 : vector<16x8xf32> to vector<2x1x8x8xf32>
    %44 = vector.extract_strided_slice %39 {offsets = [0, 8], sizes = [16, 8], strides = [1, 1]} : vector<16x32xf32> to vector<16x8xf32>
    %45 = vector.shape_cast %44 : vector<16x8xf32> to vector<2x1x8x8xf32>
    %46 = vector.extract_strided_slice %39 {offsets = [0, 16], sizes = [16, 8], strides = [1, 1]} : vector<16x32xf32> to vector<16x8xf32>
    %47 = vector.shape_cast %46 : vector<16x8xf32> to vector<2x1x8x8xf32>
    %48 = vector.extract_strided_slice %39 {offsets = [0, 24], sizes = [16, 8], strides = [1, 1]} : vector<16x32xf32> to vector<16x8xf32>
    %49 = vector.shape_cast %48 : vector<16x8xf32> to vector<2x1x8x8xf32>
    %50 = tpu.concatenate %43, %45, %47, %49 in 1 : vector<2x1x8x8xf32>, vector<2x1x8x8xf32>, vector<2x1x8x8xf32>, vector<2x1x8x8xf32> -> vector<2x4x8x8xf32>
    %51 = vector.shape_cast %50 : vector<2x4x8x8xf32> to vector<8x8x8xf32>
    %52 = arith.truncf %51 : vector<8x8x8xf32> to vector<8x8x8xbf16>
    %53 = vector.extract_strided_slice %40 {offsets = [0, 0], sizes = [16, 8], strides = [1, 1]} : vector<16x32xf32> to vector<16x8xf32>
    %54 = vector.shape_cast %53 : vector<16x8xf32> to vector<2x1x8x8xf32>
    %55 = vector.extract_strided_slice %40 {offsets = [0, 8], sizes = [16, 8], strides = [1, 1]} : vector<16x32xf32> to vector<16x8xf32>
    %56 = vector.shape_cast %55 : vector<16x8xf32> to vector<2x1x8x8xf32>
    %57 = vector.extract_strided_slice %40 {offsets = [0, 16], sizes = [16, 8], strides = [1, 1]} : vector<16x32xf32> to vector<16x8xf32>
    %58 = vector.shape_cast %57 : vector<16x8xf32> to vector<2x1x8x8xf32>
    %59 = vector.extract_strided_slice %40 {offsets = [0, 24], sizes = [16, 8], strides = [1, 1]} : vector<16x32xf32> to vector<16x8xf32>
    %60 = vector.shape_cast %59 : vector<16x8xf32> to vector<2x1x8x8xf32>
    %61 = tpu.concatenate %54, %56, %58, %60 in 1 : vector<2x1x8x8xf32>, vector<2x1x8x8xf32>, vector<2x1x8x8xf32>, vector<2x1x8x8xf32> -> vector<2x4x8x8xf32>
    %62 = vector.shape_cast %61 : vector<2x4x8x8xf32> to vector<8x8x8xf32>
    %63 = arith.truncf %62 : vector<8x8x8xf32> to vector<8x8x8xbf16>
    %64 = vector.extract_strided_slice %41 {offsets = [0, 0], sizes = [16, 8], strides = [1, 1]} : vector<16x32xf32> to vector<16x8xf32>
    %65 = vector.shape_cast %64 : vector<16x8xf32> to vector<2x1x8x8xf32>
    %66 = vector.extract_strided_slice %41 {offsets = [0, 8], sizes = [16, 8], strides = [1, 1]} : vector<16x32xf32> to vector<16x8xf32>
    %67 = vector.shape_cast %66 : vector<16x8xf32> to vector<2x1x8x8xf32>
    %68 = vector.extract_strided_slice %41 {offsets = [0, 16], sizes = [16, 8], strides = [1, 1]} : vector<16x32xf32> to vector<16x8xf32>
    %69 = vector.shape_cast %68 : vector<16x8xf32> to vector<2x1x8x8xf32>
    %70 = vector.extract_strided_slice %41 {offsets = [0, 24], sizes = [16, 8], strides = [1, 1]} : vector<16x32xf32> to vector<16x8xf32>
    %71 = vector.shape_cast %70 : vector<16x8xf32> to vector<2x1x8x8xf32>
    %72 = tpu.concatenate %65, %67, %69, %71 in 1 : vector<2x1x8x8xf32>, vector<2x1x8x8xf32>, vector<2x1x8x8xf32>, vector<2x1x8x8xf32> -> vector<2x4x8x8xf32>
    %73 = vector.shape_cast %72 : vector<2x4x8x8xf32> to vector<8x8x8xf32>
    %74 = arith.truncf %73 : vector<8x8x8xf32> to vector<8x8x8xbf16>
    "tpu.trace_start"() <{level = 10 : i32, message = "gqd,gkd->gqk"}> : () -> ()
    %cst_20 = arith.constant dense<0.000000e+00> : vector<8x8x8xf32>
    %75 = tpu.matmul %52, %63, %cst_20 {dimension_numbers = #tpu.dot_dimension_numbers<[2], [2], [1], [1], [0, 0, 0, 1, 1, 1], [0], [0]>} : vector<8x8x8xbf16>, vector<8x8x8xbf16>, vector<8x8x8xf32> -> vector<8x8x8xf32>
    "tpu.trace_stop"() : () -> ()
    %cst_21 = arith.constant dense<0xFF800000> : vector<8x8xf32>
    %76 = vector.multi_reduction <maximumf>, %75, %cst_21 [2] : vector<8x8x8xf32> to vector<8x8xf32>
    %77 = vector.shape_cast %76 : vector<8x8xf32> to vector<8x8x1xf32>
    %78 = vector.broadcast %77 : vector<8x8x1xf32> to vector<8x8x8xf32>
    %79 = arith.subf %75, %78 : vector<8x8x8xf32>
    %80 = math.exp %79 : vector<8x8x8xf32>
    %cst_22 = arith.constant dense<0.000000e+00> : vector<8x8xf32>
    %81 = vector.multi_reduction <add>, %80, %cst_22 [2] : vector<8x8x8xf32> to vector<8x8xf32>
    %82 = vector.shape_cast %81 : vector<8x8xf32> to vector<8x8x1xf32>
    %83 = tpu.reciprocal %82 {approx = true} : vector<8x8x1xf32> -> vector<8x8x1xf32>
    %84 = vector.broadcast %83 : vector<8x8x1xf32> to vector<8x8x8xf32>
    %85 = arith.mulf %80, %84 : vector<8x8x8xf32>
    %86 = arith.truncf %85 : vector<8x8x8xf32> to vector<8x8x8xbf16>
    "tpu.trace_start"() <{level = 10 : i32, message = "gqk,gkd->gqd"}> : () -> ()
    %cst_23 = arith.constant dense<0.000000e+00> : vector<8x8x8xf32>
    %87 = tpu.matmul %86, %74, %cst_23 {dimension_numbers = #tpu.dot_dimension_numbers<[2], [1], [1], [2], [0, 0, 0, 1, 1, 2], [0], [0]>} : vector<8x8x8xbf16>, vector<8x8x8xbf16>, vector<8x8x8xf32> -> vector<8x8x8xf32>
    "tpu.trace_stop"() : () -> ()
    %88 = vector.shape_cast %87 : vector<8x8x8xf32> to vector<2x4x8x8xf32>
    %89 = vector.extract_strided_slice %88 {offsets = [0, 0, 0, 0], sizes = [2, 1, 8, 8], strides = [1, 1, 1, 1]} : vector<2x4x8x8xf32> to vector<2x1x8x8xf32>
    %90 = vector.shape_cast %89 : vector<2x1x8x8xf32> to vector<2x8x8xf32>
    %91 = vector.shape_cast %90 : vector<2x8x8xf32> to vector<16x8xf32>
    %92 = vector.extract_strided_slice %88 {offsets = [0, 1, 0, 0], sizes = [2, 1, 8, 8], strides = [1, 1, 1, 1]} : vector<2x4x8x8xf32> to vector<2x1x8x8xf32>
    %93 = vector.shape_cast %92 : vector<2x1x8x8xf32> to vector<2x8x8xf32>
    %94 = vector.shape_cast %93 : vector<2x8x8xf32> to vector<16x8xf32>
    %95 = vector.extract_strided_slice %88 {offsets = [0, 2, 0, 0], sizes = [2, 1, 8, 8], strides = [1, 1, 1, 1]} : vector<2x4x8x8xf32> to vector<2x1x8x8xf32>
    %96 = vector.shape_cast %95 : vector<2x1x8x8xf32> to vector<2x8x8xf32>
    %97 = vector.shape_cast %96 : vector<2x8x8xf32> to vector<16x8xf32>
    %98 = vector.extract_strided_slice %88 {offsets = [0, 3, 0, 0], sizes = [2, 1, 8, 8], strides = [1, 1, 1, 1]} : vector<2x4x8x8xf32> to vector<2x1x8x8xf32>
    %99 = vector.shape_cast %98 : vector<2x1x8x8xf32> to vector<2x8x8xf32>
    %100 = vector.shape_cast %99 : vector<2x8x8xf32> to vector<16x8xf32>
    %101 = tpu.concatenate %91, %94, %97, %100 in 1 : vector<16x8xf32>, vector<16x8xf32>, vector<16x8xf32>, vector<16x8xf32> -> vector<16x32xf32>
    %102 = arith.truncf %101 : vector<16x32xf32> to vector<16x32xbf16>
    %c0_24 = arith.constant 0 : index
    %c0_25 = arith.constant 0 : index
    %c0_26 = arith.constant 0 : index
    %103 = vector.load %arg7[%c0_24, %c0_25, %c0_26] : memref<1x32x32xbf16, #tpu.memory_space<vmem>>, vector<1x32x32xbf16>
    %104 = vector.shape_cast %103 : vector<1x32x32xbf16> to vector<32x32xbf16>
    %cst_27 = arith.constant dense<0.000000e+00> : vector<16x32xf32>
    %105 = tpu.matmul %102, %104, %cst_27 {dimension_numbers = #tpu.dot_dimension_numbers<[1], [0], [0], [1], [0, 0, 1, 1], [], []>} : vector<16x32xbf16>, vector<32x32xbf16>, vector<16x32xf32> -> vector<16x32xf32>
    %c0_28 = arith.constant 0 : index
    %c0_29 = arith.constant 0 : index
    %c0_30 = arith.constant 0 : index
    %106 = vector.load %arg8[%c0_28, %c0_29, %c0_30] : memref<1x1x32xf32, #tpu.memory_space<vmem>>, vector<1x1x32xf32>
    %107 = vector.shape_cast %106 : vector<1x1x32xf32> to vector<1x32xf32>
    %108 = vector.broadcast %107 : vector<1x32xf32> to vector<16x32xf32>
    %109 = arith.addf %105, %108 : vector<16x32xf32>
    %110 = arith.addf %4, %109 : vector<16x32xf32>
    %c0_31 = arith.constant 0 : index
    %c0_32 = arith.constant 0 : index
    %c0_33 = arith.constant 0 : index
    %111 = vector.load %arg9[%c0_31, %c0_32, %c0_33] : memref<1x1x32xf32, #tpu.memory_space<vmem>>, vector<1x1x32xf32>
    %112 = vector.shape_cast %111 : vector<1x1x32xf32> to vector<1x32xf32>
    %c0_34 = arith.constant 0 : index
    %c0_35 = arith.constant 0 : index
    %c0_36 = arith.constant 0 : index
    %113 = vector.load %arg10[%c0_34, %c0_35, %c0_36] : memref<1x1x32xf32, #tpu.memory_space<vmem>>, vector<1x1x32xf32>
    %114 = vector.shape_cast %113 : vector<1x1x32xf32> to vector<1x32xf32>
    %cst_37 = arith.constant dense<0.000000e+00> : vector<16xf32>
    %115 = vector.multi_reduction <add>, %110, %cst_37 [1] : vector<16x32xf32> to vector<16xf32>
    %116 = vector.shape_cast %115 : vector<16xf32> to vector<16x1xf32>
    %cst_38 = arith.constant 3.200000e+01 : f32
    %117 = vector.broadcast %cst_38 : f32 to vector<16x1xf32>
    %118 = arith.divf %116, %117 : vector<16x1xf32>
    %119 = vector.broadcast %118 : vector<16x1xf32> to vector<16x32xf32>
    %120 = arith.subf %110, %119 : vector<16x32xf32>
    %121 = arith.mulf %120, %120 : vector<16x32xf32>
    %cst_39 = arith.constant dense<0.000000e+00> : vector<16xf32>
    %122 = vector.multi_reduction <add>, %121, %cst_39 [1] : vector<16x32xf32> to vector<16xf32>
    %123 = vector.shape_cast %122 : vector<16xf32> to vector<16x1xf32>
    %cst_40 = arith.constant 3.200000e+01 : f32
    %124 = vector.broadcast %cst_40 : f32 to vector<16x1xf32>
    %125 = arith.divf %123, %124 : vector<16x1xf32>
    %126 = vector.broadcast %118 : vector<16x1xf32> to vector<16x32xf32>
    %127 = arith.subf %110, %126 : vector<16x32xf32>
    %cst_41 = arith.constant 9.99999974E-6 : f32
    %128 = vector.broadcast %cst_41 : f32 to vector<16x1xf32>
    %129 = arith.addf %125, %128 : vector<16x1xf32>
    %130 = math.rsqrt %129 : vector<16x1xf32>
    %131 = vector.broadcast %130 : vector<16x1xf32> to vector<16x32xf32>
    %132 = arith.mulf %127, %131 : vector<16x32xf32>
    %133 = vector.broadcast %112 : vector<1x32xf32> to vector<16x32xf32>
    %134 = arith.mulf %132, %133 : vector<16x32xf32>
    %135 = vector.broadcast %114 : vector<1x32xf32> to vector<16x32xf32>
    %136 = arith.addf %134, %135 : vector<16x32xf32>
    %137 = arith.truncf %136 : vector<16x32xf32> to vector<16x32xbf16>
    %c0_42 = arith.constant 0 : index
    %c0_43 = arith.constant 0 : index
    %c0_44 = arith.constant 0 : index
    %138 = vector.load %arg11[%c0_42, %c0_43, %c0_44] : memref<1x32x128xbf16, #tpu.memory_space<vmem>>, vector<1x32x128xbf16>
    %139 = vector.shape_cast %138 : vector<1x32x128xbf16> to vector<32x128xbf16>
    %cst_45 = arith.constant dense<0.000000e+00> : vector<16x128xf32>
    %140 = tpu.matmul %137, %139, %cst_45 {dimension_numbers = #tpu.dot_dimension_numbers<[1], [0], [0], [1], [0, 0, 1, 1], [], []>} : vector<16x32xbf16>, vector<32x128xbf16>, vector<16x128xf32> -> vector<16x128xf32>
    %c0_46 = arith.constant 0 : index
    %c0_47 = arith.constant 0 : index
    %c0_48 = arith.constant 0 : index
    %141 = vector.load %arg12[%c0_46, %c0_47, %c0_48] : memref<1x1x128xf32, #tpu.memory_space<vmem>>, vector<1x1x128xf32>
    %142 = vector.shape_cast %141 : vector<1x1x128xf32> to vector<1x128xf32>
    %143 = vector.broadcast %142 : vector<1x128xf32> to vector<16x128xf32>
    %144 = arith.addf %140, %143 : vector<16x128xf32>
    %cst_49 = arith.constant 5.000000e-01 : f32
    %145 = vector.broadcast %cst_49 : f32 to vector<16x128xf32>
    %146 = arith.mulf %145, %144 : vector<16x128xf32>
    %cst_50 = arith.constant 4.471500e-02 : f32
    %147 = vector.broadcast %cst_50 : f32 to vector<16x128xf32>
    %148 = arith.mulf %147, %144 : vector<16x128xf32>
    %149 = arith.mulf %148, %144 : vector<16x128xf32>
    %150 = arith.mulf %149, %144 : vector<16x128xf32>
    %151 = arith.addf %144, %150 : vector<16x128xf32>
    %cst_51 = arith.constant 0.797884583 : f32
    %152 = vector.broadcast %cst_51 : f32 to vector<16x128xf32>
    %153 = arith.mulf %152, %151 : vector<16x128xf32>
    %154 = math.tanh %153 : vector<16x128xf32>
    %cst_52 = arith.constant 1.000000e+00 : f32
    %155 = vector.broadcast %cst_52 : f32 to vector<16x128xf32>
    %156 = arith.addf %155, %154 : vector<16x128xf32>
    %157 = arith.mulf %146, %156 : vector<16x128xf32>
    %158 = arith.truncf %157 : vector<16x128xf32> to vector<16x128xbf16>
    %c0_53 = arith.constant 0 : index
    %c0_54 = arith.constant 0 : index
    %c0_55 = arith.constant 0 : index
    %159 = vector.load %arg13[%c0_53, %c0_54, %c0_55] : memref<1x128x32xbf16, #tpu.memory_space<vmem>>, vector<1x128x32xbf16>
    %160 = vector.shape_cast %159 : vector<1x128x32xbf16> to vector<128x32xbf16>
    %cst_56 = arith.constant dense<0.000000e+00> : vector<16x32xf32>
    %161 = tpu.matmul %158, %160, %cst_56 {dimension_numbers = #tpu.dot_dimension_numbers<[1], [0], [0], [1], [0, 0, 1, 1], [], []>} : vector<16x128xbf16>, vector<128x32xbf16>, vector<16x32xf32> -> vector<16x32xf32>
    %c0_57 = arith.constant 0 : index
    %c0_58 = arith.constant 0 : index
    %c0_59 = arith.constant 0 : index
    %162 = vector.load %arg14[%c0_57, %c0_58, %c0_59] : memref<1x1x32xf32, #tpu.memory_space<vmem>>, vector<1x1x32xf32>
    %163 = vector.shape_cast %162 : vector<1x1x32xf32> to vector<1x32xf32>
    %164 = vector.broadcast %163 : vector<1x32xf32> to vector<16x32xf32>
    %165 = arith.addf %161, %164 : vector<16x32xf32>
    %166 = arith.addf %110, %165 : vector<16x32xf32>
    %167 = vector.shape_cast %166 : vector<16x32xf32> to vector<2x8x32xf32>
    %c0_60 = arith.constant 0 : index
    %c0_61 = arith.constant 0 : index
    %c0_62 = arith.constant 0 : index
    %168 = vector.load %arg15[%c0_60, %c0_61, %c0_62] : memref<2x8x32xf32, #tpu.memory_space<vmem>>, vector<2x8x32xf32>
    tpu.vector_store %arg15[%c0_60, %c0_61, %c0_62], %167 {strides = array<i32>} : memref<2x8x32xf32, #tpu.memory_space<vmem>>, vector<2x8x32xf32>,
    return
  }
  func.func @transform_0(%arg0: i32, %arg1: i32) -> (i32, i32, i32) {
    %c0_i32 = arith.constant 0 : i32
    %c0_i32_0 = arith.constant 0 : i32
    %c0_i32_1 = arith.constant 0 : i32
    return %arg0, %c0_i32, %c0_i32_0 : i32, i32, i32
  }
  func.func @transform_1(%arg0: i32, %arg1: i32) -> (i32, i32, i32) {
    %c0_i32 = arith.constant 0 : i32
    %c0_i32_0 = arith.constant 0 : i32
    %c0_i32_1 = arith.constant 0 : i32
    return %arg1, %c0_i32, %c0_i32_0 : i32, i32, i32
  }
  func.func @transform_2(%arg0: i32, %arg1: i32) -> (i32, i32, i32) {
    %c0_i32 = arith.constant 0 : i32
    %c0_i32_0 = arith.constant 0 : i32
    %c0_i32_1 = arith.constant 0 : i32
    return %arg1, %c0_i32, %c0_i32_0 : i32, i32, i32
  }
  func.func @transform_3(%arg0: i32, %arg1: i32) -> (i32, i32, i32) {
    %c0_i32 = arith.constant 0 : i32
    %c0_i32_0 = arith.constant 0 : i32
    %c0_i32_1 = arith.constant 0 : i32
    return %arg1, %c0_i32, %c0_i32_0 : i32, i32, i32
  }
  func.func @transform_4(%arg0: i32, %arg1: i32) -> (i32, i32, i32) {
    %c0_i32 = arith.constant 0 : i32
    %c0_i32_0 = arith.constant 0 : i32
    %c0_i32_1 = arith.constant 0 : i32
    return %arg1, %c0_i32, %c0_i32_0 : i32, i32, i32
  }
  func.func @transform_5(%arg0: i32, %arg1: i32) -> (i32, i32, i32) {
    %c0_i32 = arith.constant 0 : i32
    %c0_i32_0 = arith.constant 0 : i32
    %c0_i32_1 = arith.constant 0 : i32
    return %arg1, %c0_i32, %c0_i32_0 : i32, i32, i32
  }
  func.func @transform_6(%arg0: i32, %arg1: i32) -> (i32, i32, i32) {
    %c0_i32 = arith.constant 0 : i32
    %c0_i32_0 = arith.constant 0 : i32
    %c0_i32_1 = arith.constant 0 : i32
    return %arg1, %c0_i32, %c0_i32_0 : i32, i32, i32
  }
  func.func @transform_7(%arg0: i32, %arg1: i32) -> (i32, i32, i32) {
    %c0_i32 = arith.constant 0 : i32
    %c0_i32_0 = arith.constant 0 : i32
    %c0_i32_1 = arith.constant 0 : i32
    return %arg1, %c0_i32, %c0_i32_0 : i32, i32, i32
  }
  func.func @transform_8(%arg0: i32, %arg1: i32) -> (i32, i32, i32) {
    %c0_i32 = arith.constant 0 : i32
    %c0_i32_0 = arith.constant 0 : i32
    %c0_i32_1 = arith.constant 0 : i32
    return %arg1, %c0_i32, %c0_i32_0 : i32, i32, i32
  }
  func.func @transform_9(%arg0: i32, %arg1: i32) -> (i32, i32, i32) {
    %c0_i32 = arith.constant 0 : i32
    %c0_i32_0 = arith.constant 0 : i32
    %c0_i32_1 = arith.constant 0 : i32
    return %arg1, %c0_i32, %c0_i32_0 : i32, i32, i32
  }
  func.func @transform_10(%arg0: i32, %arg1: i32) -> (i32, i32, i32) {
    %c0_i32 = arith.constant 0 : i32
    %c0_i32_0 = arith.constant 0 : i32
    %c0_i32_1 = arith.constant 0 : i32
    return %arg1, %c0_i32, %c0_i32_0 : i32, i32, i32
  }
  func.func @transform_11(%arg0: i32, %arg1: i32) -> (i32, i32, i32) {
    %c0_i32 = arith.constant 0 : i32
    %c0_i32_0 = arith.constant 0 : i32
    %c0_i32_1 = arith.constant 0 : i32
    return %arg1, %c0_i32, %c0_i32_0 : i32, i32, i32
  }
  func.func @transform_12(%arg0: i32, %arg1: i32) -> (i32, i32, i32) {
    %c0_i32 = arith.constant 0 : i32
    %c0_i32_0 = arith.constant 0 : i32
    %c0_i32_1 = arith.constant 0 : i32
    return %arg1, %c0_i32, %c0_i32_0 : i32, i32, i32
  }
  func.func @transform_13(%arg0: i32, %arg1: i32) -> (i32, i32, i32) {
    %c0_i32 = arith.constant 0 : i32
    %c0_i32_0 = arith.constant 0 : i32
    %c0_i32_1 = arith.constant 0 : i32
    return %arg0, %c0_i32, %c0_i32_0 : i32, i32, i32
  }
}

</mosaic_0001>

<bundles_post_ra>
// kernel: tpu_custom_call.1
= control target key start
LH: loop header
LB: loop body
LE: loop exit
PB: predicated region body
PF: predicated region fallthrough
CT: control target
= control target key end

     0   :  { %s3333_s0 = inlined_call_operand.vmem [shape: f32[4,8,32], index: 0, kind: input, shape index: {}]   ;;  %s3334_s1 = inlined_call_operand.vmem [shape: f32[2,1,32], index: 1, kind: input, shape index: {}]   ;;  %s3335_s2 = inlined_call_operand.vmem [shape: f32[2,1,32], index: 2, kind: input, shape index: {}]   ;;  %s3336_s3 = inlined_call_operand.vmem [shape: bf16[2,32,96], index: 3, kind: input, shape index: {}]   ;;  %s3337_s4 = inlined_call_operand.vmem [shape: f32[2,1,96], index: 4, kind: input, shape index: {}]   ;;  %s3338_s5 = inlined_call_operand.vmem [shape: bf16[2,32,32], index: 5, kind: input, shape index: {}]   ;;  %s3339_s6 = inlined_call_operand.vmem [shape: f32[2,1,32], index: 6, kind: input, shape index: {}]   ;;  %s3340_s7 = inlined_call_operand.vmem [shape: f32[2,1,32], index: 7, kind: input, shape index: {}]   ;;  %s3341_s8 = inlined_call_operand.vmem [shape: f32[2,1,32], index: 8, kind: input, shape index: {}]   ;;  %s3342_s9 = inlined_call_operand.vmem [shape: bf16[2,32,128], index: 9, kind: input, shape index: {}]   ;;  %s3343_s10 = inlined_call_operand.vmem [shape: f32[2,1,128], index: 10, kind: input, shape index: {}]   ;;  %s3344_s11 = inlined_call_operand.vmem [shape: bf16[2,128,32], index: 11, kind: input, shape index: {}]   ;;  %s3345_s12 = inlined_call_operand.vmem [shape: f32[2,1,32], index: 12, kind: input, shape index: {}]   ;;  %s3346_s13 = inlined_call_operand.hbm [shape: f32[4,8,32], index: 13, kind: output, shape index: {}]  }
   0x1   :  { %3362 = sst [smem:[#allocation18_spill]] %s3333_s0 }
   0x2   :  { %3363 = sst [smem:[#allocation19_spill]] %s3336_s3 }
   0x3   :  { %3364 = sst [smem:[#allocation20_spill]] %s3338_s5 }
   0x4   :  { %3365 = sst [smem:[#allocation21_spill]] %s3340_s7 }
   0x5   :  { %3366 = sst [smem:[#allocation22_spill]] %s3344_s11 }
   0x6   :  { %3367 = sst [smem:[#allocation23_spill]] %s3346_s13 }
   0x7   :  { %18 = vsyncpa [#allocation3], 0 }
   0x8   :  { %20 = vsyncpa [#allocation3 + $0x1], 0  ;;  %s2819_s25 = smov 0   ;;  %s2821_s26 = smov 0  }
   0x9   :  { %s2823_s27 = smov 0   ;;  %s2825_s28 = smov 0  }
   0xa   :  { %s2827_s29 = smov 0   ;;  %s2829_s30 = smov 0  }
   0xb   :  { %s2831_s14 = smov 0   ;;  %s2833_s15 = smov 0  }
   0xc LB: > { %3368 = sst [smem:[#allocation5_spill]] %s2707_s25  ;;  %s2230_s16 = sadd.s32 4294967295, %s2735_s15   ;;  %s2735_s15 = sphi %s2833_s15, %s26_s15   ;;  %s2731_s14 = sphi %s2831_s14, %s3409_s14   ;;  %s2727_s30 = sphi %s2829_s30, %s3408_s30   ;;  %s2723_s29 = sphi %s2827_s29, %s3407_s29   ;;  %s2719_s28 = sphi %s2825_s28, %s3406_s28   ;;  %s2715_s27 = sphi %s2823_s27, %s3405_s27   ;;  %s2711_s26 = sphi %s2821_s26, %s3404_s26   ;;  %s2707_s25 = sphi %s2819_s25, %s3403_s25  }
   0xd   : > { %3369 = sst [smem:[#allocation6_spill]] %s2711_s26  ;;  %s2231_s17 = sadd.s32 4294967294, %s2735_s15  }
   0xe   : > { %3370 = sst [smem:[#allocation7_spill]] %s2715_s27  ;;  %s35_s18 = sadd.s32 1, %s2727_s30 }
   0xf   : > { %3371 = sst [smem:[#allocation8_spill]] %s2719_s28  ;;  %p36_p0 = scmp.ge.s32.totalorder %s35_s18, 2 }
  0x10   : > { %3372 = sst [smem:[#allocation9_spill]] %s2723_s29  ;;  %s38_s19 = sadd.s32 1, %s2731_s14 }
  0x11   : > { %3373 = sst [smem:[#allocation10_spill]] %s2727_s30  ;;  %p393_p1 = scmp.ne.s32.totalorder %s2715_s27, %s2711_s26 }
  0x12   : > { %3374 = sst [smem:[#allocation11_spill]] %s2731_s14  ;;  %p394_p2 = scmp.eq.s32.totalorder %s2230_s16, 3 }
  0x13   : > { %3375 = sst [smem:[#allocation12_spill]] %s2735_s15  ;;  %s3411_s18 = smov (%p36_p0, %s35_s18), 0 }
  0x14   : > { %3376 = sst [smem:[#allocation13_spill]] %s3411_s18  ;;  %s3413_s19 = smov (!%p36_p0, %s38_s19), %s2731_s14 }
  0x15   : > { %p2868_p3 = por %p394_p2, %p393_p1  ;;  %p399_p4 = scmp.ne.s32.totalorder %s2711_s26, %s2707_s25 }
  0x16   : > { %p40_p5 = scmp.ge.s32.totalorder %s3413_s19, 2  ;;  %p400_p6 = scmp.eq.s32.totalorder %s2231_s17, 3 }
  0x17   : > { %s3377_s20 = scalar_select %p2868_p3, 1, 0 }
  0x18   : > { %p2234_p7 = scmp.ge.s32.totalorder %s2735_s15, 1  ;;  %p507_p8 = scmp.lt.s32.totalorder %s2735_s15, 5 }
  0x19   : > { %3378 = sst [smem:[#allocation14_spill]] %s3377_s20  ;;  %s3415_s19 = smov (%p40_p5, %s3413_s19), 0 }
  0x1a   : > { %3379 = sst [smem:[#allocation15_spill]] %s3415_s19  ;;  %p2878_p9 = por %p400_p6, %p399_p4 }
  0x1b   : > { %p508_p10 = pnand %p2234_p7, %p507_p8  ;;  %s380_s22 = ssub.s32 %s2731_s14, %s3415_s19 }
  0x1c   : > { %s3380_s21 = scalar_select %p2878_p9, 1, 0 }
  0x1d   : > { %s383_s23 = sadd.s32 1, %s2715_s27  ;;  %p381_p11 = scmp.eq.s32.totalorder %s380_s22, 0 }
  0x1e   : > { %3381 = sst [smem:[#allocation16_spill]] %s3380_s21  ;;  %511 = sbr.rel (%p508_p10) target bundleno = 2664 (0xa68), region = 72 }
  0x1f   : > { %s2886_s24 = scalar_select %p381_p11, %s2715_s27, %s383_s23  }
  0x20   : > { %s3349_s16 = sand.u32 (!%p508_p10), 1, %s2711_s26   ;;  %s2236_s17 = sshll.u32 (!%p508_p10), %s2723_s29, 1 }
  0x21   : > { %3382 = sst [smem:[#allocation17_spill]] %s2886_s24  ;;  %s2235_s18 = sshll.u32 (!%p508_p10), %s3349_s16, 4 }
  0x22   : > { %p596_p12 = scmp.lt.s32.totalorder (!%p508_p10), %s2236_s17, 3  ;;  %p601_p13 = scmp.lt.s32.totalorder (!%p508_p10), %s2719_s28, 1 }
  0x23   : > { %s3383_s0 = sld [smem:[#allocation18_spill]]  ;;  %s2953_s26 = scalar_lea.vmem [#allocation2], %s2235_s18 }
  0x24   : > { %s3417_s17 = smov (!%p596_p12, %s2236_s17), 3  ;;  %s3384_s3 = sld [smem:[#allocation19_spill]] }
  0x25   : > { %s2894_s30 = scalar_select %p601_p13, %s2719_s28, 1 }
  0x26   : > { %s2237_s22 = sshll.u32 %s3417_s17, 3  ;;  %s3385_s5 = sld [smem:[#allocation20_spill]] }
  0x27   : > { %s2293_s13 = sshll.u32 %s2894_s30, 4  ;;  %s636_s11 = scalar_lea.vmem %s3343_s10, %s2894_s30 }
  0x28   : > { %s2937_s17 = scalar_lea.vmem %s3342_s9, %s2293_s13  ;;  %s644_s25 = scalar_lea.vmem %s3345_s12, %s2894_s30 }
  0x29   : > { %s599_s16 = scalar_lea.vmem %s3383_s0, %s2237_s22  ;;  %s628_s0 = scalar_lea.vmem %s3341_s8, %s2894_s30 }
  0x2a   : > { %s2911_s29 = scalar_lea.vmem %s3384_s3, %s2293_s13  ;;  %s3387_s27 = sld [smem:[#allocation22_spill]] }
  0x2b   : > { %s3388_s20 = sld [smem:[#allocation8_spill]] }
  0x2c   : > { %s2920_s23 = scalar_lea.vmem %s3385_s5, %s2293_s13  ;;  %s2296_s5 = sshll.u32 %s2894_s30, 6 }
  0x30   : > { %s2951_s7 = scalar_lea.vmem %s3387_s27, %s2296_s5 }
  0x31   : > { %p2246_p0 = scmp.ne.s32.totalorder %s3388_s20, 0 }
  0x33   : > { %650 = sbr.rel (%p2246_p0) target bundleno = 58 (0x3a), region = 76 }
  0x38   : > { %v651_v0 = vld [vmem:[%s599_s16] sm:$0xff]  ;;  %vm653_vm0 = vcmask 261120   ;;  %v652_v1 = vld [vmem:[%s599_s16 + $0x8] sm:$0xff] }
  0x39   : > { %654 = vst.msk [vmem:[%s2953_s26] sm:$0xff] %vm653_vm0, %v651_v0  ;;  %655 = vst.msk [vmem:[%s2953_s26 + $0x8] sm:$0xff] %vm653_vm0, %v652_v1 }
  0x3a PF: > { %vm660_vm1 = vcmask 261120   ;;  %v2585_v16 = vld [vmem:[%s2911_s29 + $0x8] sm:$0xff]   ;;  %v2737_v17 = vmov 0.0   ;;  %vm2738_vm2 = vmmov 0   ;;  %v2586_v18 = vld [vmem:[%s2911_s29] sm:$0xff]   ;;  %s3389_s13 = scalar_lea.vmem %s3334_s1, %s2894_s30  ;;  %s3390_s18 = scalar_lea.vmem %s3335_s2, %s2894_s30  ;;  %vm803_vm3 = vcmask 64512  }
  0x3b   : > { %2348 = vmatprep.subr.bf16.mxu0 %v2737_v17  ;;  %2352 = vmatprep.mubr.msk.bf16.mxu0 %vm2738_vm2, %v2737_v17  ;;  %v2247_v27 = vld [vmem:[%s3389_s13] ss:$0 sm:$0xff]  ;;  %s3391_s19 = scalar_lea.vmem %s3337_s4, %s2894_s30  ;;  %s2739_s22 = smov 112   ;;  %vm1294_vm4 = vcmask 1043456   ;;  %vm1700_vm5 = vcmask 130048   ;;  %vm1703_vm6 = vcmask 195584  }
  0x3c   : > { %2349 = vmatpush3.bf16.msra.mxu0 %v2585_v16  ;;  %2368 = vmatprep.subr.bf16.mxu1 %v2737_v17  ;;  %v2248_v31 = vld [vmem:[%s3390_s18] ss:$0 sm:$0xff]  ;;  %s2740_s14 = smov 120   ;;  %s2741_s24 = smov 104  }
  0x3d   : > { %2350 = vmatprep.subr.bf16.mxu0 %v2737_v17  ;;  %2370 = vmatprep.mubr.msk.bf16.mxu1 %vm2738_vm2, %v2737_v17  ;;  %v2249_v36 = vld [vmem:[%s3391_s19] ss:$0 sm:$0xff]  ;;  %s2742_s15 = smov 96   ;;  %s2743_s21 = smov 64  }
  0x3e   : > { %s2744_s20 = smov 16   ;;  %s2745_s3 = smov 8  }
  0x3f   : > { %s2746_s5 = smov 24   ;;  %s3392_s27 = scalar_lea.vmem %s3339_s6, %s2894_s30 }
  0x40   : > { %v2959_v2 = vld [vmem:[%s2953_s26] sm:$0xff]  ;;  %v2962_v3 = vld [vmem:[%s2953_s26 + $0x8] sm:$0xff]  ;;  %2351 = vmatpush3.bf16.msra.mxu0 %v2586_v18  ;;  %s3393_s16 = sld [smem:[#allocation21_spill]]  ;;  %s2747_s18 = smov [#allocation2]  }
  0x41   : > { %v661_v4 = vsel %vm660_vm1, %v2959_v2, 0.0  ;;  %v664_v5 = vsel %vm660_vm1, %v2962_v3, 0.0  ;;  %2356 = vmatprep.subr.bf16.mxu0 %v2737_v17  ;;  %s3398_s13 = sld [smem:[#allocation23_spill]] }
  0x42   : > { %662 = vadd.xlane.f32.xlu0 %v661_v4 }
  0x46   : > { %665 = vadd.xlane.f32.xlu0 %v664_v5 }
  0xcb   : > { %v663_v6 = vpop.xlane.xlu0 %662 }
  0xcc   : > { %v668_v7 = vmul.f32 0.03125, %v663_v6 }
  0xce   : > { %v670_v8 = vsub.f32 %v2959_v2, %v668_v7 }
  0xcf   : > { %v666_v9 = vpop.xlane.xlu0 %665 }
  0xd0   : > { %v669_v10 = vmul.f32 0.03125, %v666_v9  ;;  %v672_v11 = vmul.f32 %v670_v8, %v670_v8 }
  0xd2   : > { %v671_v12 = vsub.f32 %v2962_v3, %v669_v10  ;;  %v674_v13 = vsel %vm660_vm1, %v672_v11, 0.0 }
  0xd3   : > { %675 = vadd.xlane.f32.xlu1 %v674_v13 }
  0xd4   : > { %v673_v14 = vmul.f32 %v671_v12, %v671_v12 }
  0xd6   : > { %v677_v15 = vsel %vm660_vm1, %v673_v14, 0.0 }
  0xd7   : > { %678 = vadd.xlane.f32.xlu1 %v677_v15 }
 0x15c   : > { %v676_v19 = vpop.xlane.xlu1 %675 }
 0x15d   : > { %v680_v20 = vmul.f32 0.03125, %v676_v19 }
 0x15f   : > { %v682_v21 = vadd.f32 1e-05, %v680_v20 }
 0x160   : > { %v679_v22 = vpop.xlane.xlu1 %678 }
 0x161   : > { %2599 = vrsqrt.f32 %v682_v21  ;;  %v681_v23 = vmul.f32 0.03125, %v679_v22 }
 0x163   : > { %v683_v24 = vadd.f32 1e-05, %v681_v23 }
 0x165   : > { %2601 = vrsqrt.f32 %v683_v24 }
 0x16e   : > { %v2600_v25 = vpop.eup %2599 }
 0x16f   : > { %v686_v26 = vmul.f32 %v2600_v25, %v670_v8 }
 0x171   : > { %v694_v30 = vmul.f32 %v2247_v27, %v686_v26 }
 0x172   : > { %v2602_v28 = vpop.eup %2601 }
 0x173   : > { %v687_v29 = vmul.f32 %v2602_v28, %v671_v12  ;;  %v702_v33 = vadd.f32 %v2248_v31, %v694_v30 }
 0x175   : > { %v695_v32 = vmul.f32 %v2247_v27, %v687_v29 }
 0x177   : > { %v703_v34 = vadd.f32 %v2248_v31, %v695_v32 }
 0x179   : > { %v704_v35 = vpack.c.bf16 %v703_v34, %v702_v33 }
 0x17b   : > { %2353 = vmatmul.mubr.msk.bf16.vlgmr.msra.gmra.mxu0 %vm660_vm1, %v704_v35 }
 0x17c   : > { %2358 = vmatprep.mubr.msk.bf16.mxu0 %vm2738_vm2, %v2737_v17 }
 0x23b   : > { %v765_v37 = vpop.f32.mrf.mxu0 }
 0x23c   : > { %v766_v38 = vadd.f32 %v2249_v36, %v765_v37 }
 0x23d   : > { %v2354_v39 = vpop.f32.mrf.mxu0 }
 0x23e   : > { %780 = vrot.lane.b32.xlu1 %v766_v38, %s2739_s22  ;;  %774 = vrot.lane.b32.xlu0 %v766_v38, %s2740_s14  ;;  %v3000_v43 = vpack.c.bf16 %v766_v38, %v766_v38 }
 0x23f   : > { %v768_v40 = vpop.f32.mrf.mxu0 }
 0x240   : > { %v769_v41 = vadd.f32 %v2249_v36, %v768_v40 }
 0x241   : > { %v2355_v42 = vpop.f32.mrf.mxu0 }
 0x242   : > { %786 = vrot.lane.b32.xlu1 %v766_v38, %s2741_s24  ;;  %782 = vrot.lane.b32.xlu0 %v769_v41, %s2739_s22  ;;  %v3011_v51 = vpack.c.bf16 %v769_v41, %v769_v41 }
 0x246   : > { %801 = vrot.lane.b32.xlu0 %v3000_v43, %s2742_s15  ;;  %776 = vrot.lane.b32.xlu1 %v769_v41, %s2740_s14 }
 0x24a   : > { %788 = vrot.lane.b32.xlu1 %v769_v41, %s2741_s24  ;;  %s3396_s24 = sld [smem:[#allocation6_spill]] }
 0x2b0   : > { %v781_v44 = vpop.permute.xlu1 %780  ;;  %v775_v45 = vpop.permute.xlu0 %774 }
 0x2b1   : > { %v3003_v46 = vpack.c.bf16 %v781_v44, %v781_v44  ;;  %v3005_v47 = vpack.c.bf16 %v775_v45, %v775_v45 }
 0x2b3   : > { %900 = vrot.lane.b32.xlu0 %v3003_v46, %s2742_s15  ;;  %851 = vrot.lane.b32.xlu1 %v3005_v47, %s2742_s15 }
 0x2b4   : > { %v787_v48 = vpop.permute.xlu1 %786  ;;  %v783_v49 = vpop.permute.xlu0 %782 }
 0x2b5   : > { %v3009_v50 = vpack.c.bf16 %v787_v48, %v787_v48  ;;  %v3015_v54 = vpack.c.bf16 %v783_v49, %v783_v49 }
 0x2b7   : > { %949 = vrot.lane.b32.xlu1 %v3009_v50, %s2742_s15  ;;  %998 = vrot.lane.b32.xlu0 %v3011_v51, %s2742_s15 }
 0x2b8   : > { %v802_v52 = vpop.permute.xlu0 %801  ;;  %v777_v53 = vpop.permute.xlu1 %776 }
 0x2b9   : > { %v808_v55 = vsel %vm803_vm3, %v802_v52, 0  ;;  %v3018_v56 = vpack.c.bf16 %v777_v53, %v777_v53 }
 0x2ba   : > { %2357 = vmatpush3.bf16.xpose.msra.mxu0 %v808_v55 }
 0x2bb   : > { %1047 = vrot.lane.b32.xlu1 %v3018_v56, %s2742_s15  ;;  %1096 = vrot.lane.b32.xlu0 %v3015_v54, %s2742_s15 }
 0x2bc   : > { %v789_v57 = vpop.permute.xlu1 %788  ;;  %2362 = vmatprep.subr.bf16.mxu0 %v2737_v17 }
 0x2bd   : > { %v3023_v58 = vpack.c.bf16 %v789_v57, %v789_v57 }
 0x2bf   : > { %1145 = vrot.lane.b32.xlu1 %v3023_v58, %s2742_s15 }
 0x2c1   : > { %2359 = vmatmul.mubr.msk.bf16.vlgmr.msra.gmra.mxu0 %vm803_vm3, %v3000_v43 }
 0x2c2   : > { %2364 = vmatprep.mubr.msk.bf16.mxu0 %vm2738_vm2, %v2737_v17 }
 0x325   : > { %v901_v59 = vpop.permute.xlu0 %900  ;;  %v852_v60 = vpop.permute.xlu1 %851 }
 0x326   : > { %v857_v61 = vsel %vm803_vm3, %v852_v60, 0  ;;  %v906_v62 = vsel %vm803_vm3, %v901_v59, 0 }
 0x327   : > { %2363 = vmatpush3.bf16.xpose.msra.mxu0 %v857_v61  ;;  %2369 = vmatpush3.bf16.xpose.msra.mxu1 %v906_v62 }
 0x328   : > { %2374 = vmatprep.subr.bf16.mxu0 %v2737_v17  ;;  %2380 = vmatprep.subr.bf16.mxu1 %v2737_v17 }
 0x329   : > { %v950_v63 = vpop.permute.xlu1 %949  ;;  %v999_v0 = vpop.permute.xlu0 %998 }
 0x32a   : > { %v955_v1 = vsel %vm803_vm3, %v950_v63, 0  ;;  %v1004_v4 = vsel %vm803_vm3, %v999_v0, 0 }
 0x32d   : > { %v1048_v5 = vpop.permute.xlu1 %1047  ;;  %v1097_v6 = vpop.permute.xlu0 %1096 }
 0x32e   : > { %2365 = vmatmul.mubr.msk.bf16.vlgmr.msra.gmra.mxu0 %vm803_vm3, %v3005_v47  ;;  %2371 = vmatmul.mubr.msk.bf16.vlgmr.msra.gmra.mxu1 %vm803_vm3, %v3003_v46  ;;  %v1053_v7 = vsel %vm803_vm3, %v1048_v5, 0  ;;  %v1102_v8 = vsel %vm803_vm3, %v1097_v6, 0 }
 0x32f   : > { %2375 = vmatpush3.bf16.xpose.msra.mxu0 %v955_v1  ;;  %2381 = vmatpush3.bf16.xpose.msra.mxu1 %v1004_v4 }
 0x330   : > { %2376 = vmatprep.mubr.msk.bf16.mxu0 %vm2738_vm2, %v2737_v17  ;;  %2382 = vmatprep.mubr.msk.bf16.mxu1 %vm2738_vm2, %v2737_v17 }
 0x331   : > { %2386 = vmatprep.subr.bf16.mxu0 %v2737_v17  ;;  %2392 = vmatprep.subr.bf16.mxu1 %v2737_v17  ;;  %v1146_v9 = vpop.permute.xlu1 %1145 }
 0x332   : > { %v1151_v10 = vsel %vm803_vm3, %v1146_v9, 0 }
 0x336   : > { %2377 = vmatmul.mubr.msk.bf16.vlgmr.msra.gmra.mxu0 %vm803_vm3, %v3009_v50  ;;  %2383 = vmatmul.mubr.msk.bf16.vlgmr.msra.gmra.mxu1 %vm803_vm3, %v3011_v51 }
 0x337   : > { %2387 = vmatpush3.bf16.xpose.msra.mxu0 %v1053_v7  ;;  %2393 = vmatpush3.bf16.xpose.msra.mxu1 %v1102_v8 }
 0x338   : > { %2388 = vmatprep.mubr.msk.bf16.mxu0 %vm2738_vm2, %v2737_v17  ;;  %2394 = vmatprep.mubr.msk.bf16.mxu1 %vm2738_vm2, %v2737_v17 }
 0x339   : > { %2398 = vmatprep.subr.bf16.mxu0 %v2737_v17  ;;  %2404 = vmatprep.subr.bf16.mxu1 %v2737_v17 }
 0x33e   : > { %2389 = vmatmul.mubr.msk.bf16.vlgmr.msra.gmra.mxu0 %vm803_vm3, %v3018_v56  ;;  %2395 = vmatmul.mubr.msk.bf16.vlgmr.msra.gmra.mxu1 %vm803_vm3, %v3015_v54 }
 0x33f   : > { %2399 = vmatpush3.bf16.xpose.msra.mxu0 %v1151_v10  ;;  %2400 = vmatprep.mubr.msk.bf16.mxu0 %vm2738_vm2, %v2737_v17 }
 0x340   : > { %2410 = vmatprep.subr.bf16.mxu0 %v2737_v17  ;;  %2406 = vmatprep.mubr.msk.bf16.mxu1 %vm2738_vm2, %v2737_v17 }
 0x346   : > { %2401 = vmatmul.mubr.msk.bf16.vlgmr.msra.gmra.mxu0 %vm803_vm3, %v3023_v58 }
 0x347   : > { %2412 = vmatprep.mubr.msk.bf16.mxu0 %vm2738_vm2, %v2737_v17 }
 0x381   : > { %v844_v11 = vpop.f32.mrf.mxu0 }
 0x382   : > { %v1193_v12 = vsel %vm803_vm3, %v844_v11, -inf }
 0x383   : > { %1194 = vmax.xlane.f32.xlu0 %v1193_v12  ;;  %v2360_v13 = vpop.f32.mrf.mxu0 }
 0x385   : > { %v847_v14 = vpop.f32.mrf.mxu0 }
 0x387   : > { %v2361_v15 = vpop.f32.mrf.mxu0 }
 0x3ee   : > { %v893_v16 = vpop.f32.mrf.mxu0  ;;  %v942_v18 = vpop.f32.mrf.mxu1 }
 0x3ef   : > { %v1199_v19 = vsel %vm803_vm3, %v942_v18, -inf  ;;  %v1196_v20 = vsel %vm803_vm3, %v893_v16, -inf }
 0x3f0   : > { %v2372_v21 = vpop.f32.mrf.mxu1  ;;  %1200 = vmax.xlane.f32.xlu0 %v1199_v19  ;;  %1197 = vmax.xlane.f32.xlu1 %v1196_v20  ;;  %v2366_v22 = vpop.f32.mrf.mxu0 }
 0x3f2   : > { %v896_v23 = vpop.f32.mrf.mxu0  ;;  %v945_v24 = vpop.f32.mrf.mxu1 }
 0x3f4   : > { %v2367_v25 = vpop.f32.mrf.mxu0  ;;  %v2373_v26 = vpop.f32.mrf.mxu1 }
 0x3f6   : > { %v3075_v27 = vpop.f32.mrf.mxu0  ;;  %v3077_v28 = vpop.f32.mrf.mxu1 }
 0x3f7   : > { %v1202_v29 = vsel %vm803_vm3, %v3075_v27, -inf  ;;  %v1205_v34 = vsel %vm803_vm3, %v3077_v28, -inf }
 0x3f8   : > { %v2384_v30 = vpop.f32.mrf.mxu1  ;;  %1203 = vmax.xlane.f32.xlu0 %v1202_v29  ;;  %v2378_v31 = vpop.f32.mrf.mxu0 }
 0x3fa   : > { %v994_v32 = vpop.f32.mrf.mxu0  ;;  %v1043_v33 = vpop.f32.mrf.mxu1 }
 0x3fc   : > { %v2385_v35 = vpop.f32.mrf.mxu1  ;;  %1206 = vmax.xlane.f32.xlu0 %v1205_v34  ;;  %v2379_v36 = vpop.f32.mrf.mxu0 }
 0x3fe   : > { %v3083_v37 = vpop.f32.mrf.mxu0  ;;  %v3085_v38 = vpop.f32.mrf.mxu1 }
 0x3ff   : > { %v1211_v39 = vsel %vm803_vm3, %v3085_v38, -inf  ;;  %v1208_v40 = vsel %vm803_vm3, %v3083_v37, -inf }
 0x400   : > { %v2396_v41 = vpop.f32.mrf.mxu1  ;;  %1212 = vmax.xlane.f32.xlu0 %v1211_v39  ;;  %1209 = vmax.xlane.f32.xlu1 %v1208_v40  ;;  %v2390_v42 = vpop.f32.mrf.mxu0 }
 0x402   : > { %v1092_v44 = vpop.f32.mrf.mxu0  ;;  %v1141_v45 = vpop.f32.mrf.mxu1 }
 0x404   : > { %v2391_v48 = vpop.f32.mrf.mxu0  ;;  %v2397_v49 = vpop.f32.mrf.mxu1 }
 0x406   : > { %v3091_v52 = vpop.f32.mrf.mxu0 }
 0x407   : > { %v1214_v0 = vsel %vm803_vm3, %v3091_v52, -inf }
 0x408   : > { %v2402_v53 = vpop.f32.mrf.mxu0 }
 0x40a   : > { %v1190_v55 = vpop.f32.mrf.mxu0 }
 0x40c   : > { %v2403_v57 = vpop.f32.mrf.mxu0  ;;  %v1195_v59 = vpop.xlane.xlu0 %1194 }
 0x40d   : > { %v1217_v60 = vsub.f32 %v844_v11, %v1195_v59 }
 0x40f   : > { %v1225_v61 = vmul.f32 1.442695, %v1217_v60 }
 0x411   : > { %1338 = vrot.lane.b32.xlu1 %v3005_v47, %s2743_s21  ;;  %2603 = vpow2.f32 %v1225_v61 }
 0x415   : > { %1386 = vrot.lane.b32.xlu1 %v3003_v46, %s2743_s21 }
 0x416   : > { %1289 = vrot.lane.b32.xlu0 %v3000_v43, %s2743_s21 }
 0x41e   : > { %v3099_v62 = vpop.eup %2603 }
 0x41f   : > { %v1241_v63 = vsel %vm803_vm3, %v3099_v62, 0.0 }
 0x435   : > { %1242 = vadd.xlane.f32.xlu0 %v1241_v63 }
 0x439   : > { %1215 = vmax.xlane.f32.xlu1 %v1214_v0 }
 0x44a   : > { %1434 = vrot.lane.b32.xlu1 %v3009_v50, %s2743_s21 }
 0x479   : > { %v1201_v46 = vpop.xlane.xlu0 %1200  ;;  %v1198_v47 = vpop.xlane.xlu1 %1197 }
 0x47a   : > { %v1219_v43 = vsub.f32 %v942_v18, %v1201_v46  ;;  %v1218_v1 = vsub.f32 %v893_v16, %v1198_v47 }
 0x47c   : > { %v1229_v4 = vmul.f32 1.442695, %v1219_v43  ;;  %v1227_v5 = vmul.f32 1.442695, %v1218_v1 }
 0x47e   : > { %2605 = vpow2.f32 %v1229_v4 }
 0x47f   : > { %2607 = vpow2.f32 %v1227_v5 }
 0x481   : > { %v1204_v6 = vpop.xlane.xlu0 %1203 }
 0x482   : > { %v1220_v19 = vsub.f32 %v3075_v27, %v1204_v6 }
 0x484   : > { %v1231_v22 = vmul.f32 1.442695, %v1220_v19 }
 0x485   : > { %v1207_v7 = vpop.xlane.xlu0 %1206 }
 0x486   : > { %v1221_v18 = vsub.f32 %v3077_v28, %v1207_v7 }
 0x488   : > { %v1233_v20 = vmul.f32 1.442695, %v1221_v18 }
 0x489   : > { %v1213_v8 = vpop.xlane.xlu0 %1212  ;;  %v1210_v9 = vpop.xlane.xlu1 %1209 }
 0x48a   : > { %v1223_v21 = vsub.f32 %v3085_v38, %v1213_v8  ;;  %v1222_v23 = vsub.f32 %v3083_v37, %v1210_v9  ;;  %2609 = vpow2.f32 %v1233_v20 }
 0x48b   : > { %v3107_v10 = vpop.eup %2605  ;;  %2611 = vpow2.f32 %v1231_v22 }
 0x48c   : > { %v3109_v11 = vpop.eup %2607  ;;  %v1247_v50 = vsel %vm803_vm3, %v3107_v10, 0.0  ;;  %v1237_v24 = vmul.f32 1.442695, %v1223_v21  ;;  %v1235_v25 = vmul.f32 1.442695, %v1222_v23 }
 0x48d   : > { %1248 = vadd.xlane.f32.xlu0 %v1247_v50  ;;  %v1290_v12 = vpop.permute.xlu0 %1289  ;;  %v1339_v13 = vpop.permute.xlu1 %1338  ;;  %v1244_v14 = vsel %vm803_vm3, %v3109_v11, 0.0 }
 0x48e   : > { %v1296_v15 = vsel %vm1294_vm4, %v1290_v12, 0  ;;  %v1344_v16 = vsel %vm1294_vm4, %v1339_v13, 0  ;;  %1245 = vadd.xlane.f32.xlu1 %v1244_v14  ;;  %2613 = vpow2.f32 %v1237_v24 }
 0x48f   : > { %2405 = vmatpush3.bf16.msra.mxu1 %v1296_v15  ;;  %2411 = vmatpush3.bf16.msra.mxu0 %v1344_v16  ;;  %2615 = vpow2.f32 %v1235_v25 }
 0x490   : > { %2416 = vmatprep.subr.bf16.mxu1 %v2737_v17  ;;  %2422 = vmatprep.subr.bf16.mxu0 %v2737_v17 }
 0x491   : > { %v1387_v26 = vpop.permute.xlu1 %1386 }
 0x492   : > { %v1392_v40 = vsel %vm1294_vm4, %v1387_v26, 0 }
 0x49f   : > { %1530 = vrot.lane.b32.xlu1 %v3018_v56, %s2743_s21  ;;  %v3127_v56 = vpop.eup %2609 }
 0x4a0   : > { %v3129_v29 = vpop.eup %2611  ;;  %v1253_v27 = vsel %vm803_vm3, %v3127_v56, 0.0 }
 0x4a1   : > { %v3133_v28 = vpop.eup %2613  ;;  %v1250_v30 = vsel %vm803_vm3, %v3129_v29, 0.0 }
 0x4a2   : > { %v3137_v32 = vpop.eup %2615  ;;  %v1259_v35 = vsel %vm803_vm3, %v3133_v28, 0.0 }
 0x4a3   : > { %1482 = vrot.lane.b32.xlu0 %v3011_v51, %s2743_s21  ;;  %v1256_v36 = vsel %vm803_vm3, %v3137_v32, 0.0 }
 0x4be   : > { %v1243_v51 = vpop.xlane.xlu0 %1242 }
 0x4bf   : > { %2617 = vrcp.f32 %v1243_v51 }
 0x4c2   : > { %1254 = vadd.xlane.f32.xlu0 %v1253_v27  ;;  %v1216_v31 = vpop.xlane.xlu1 %1215 }
 0x4c3   : > { %1251 = vadd.xlane.f32.xlu1 %v1250_v30  ;;  %v1224_v33 = vsub.f32 %v3091_v52, %v1216_v31 }
 0x4c5   : > { %v1239_v34 = vmul.f32 1.442695, %v1224_v33 }
 0x4c6   : > { %1260 = vadd.xlane.f32.xlu0 %v1259_v35  ;;  %v1435_v44 = vpop.permute.xlu1 %1434 }
 0x4c7   : > { %2619 = vpow2.f32 %v1239_v34  ;;  %1257 = vadd.xlane.f32.xlu1 %v1256_v36  ;;  %v2587_v34 = vld [vmem:[%s2920_s23 + $0x8] sm:$0xff]  }
 0x4cc   : > { %v2618_v37 = vpop.eup %2617 }
 0x4cd   : > { %v1273_v38 = vmul.f32 %v2618_v37, %v3099_v62 }
 0x4cf   : > { %v1281_v39 = vpack.c.bf16 %v1273_v38, %v1273_v38 }
 0x4d1   : > { %2407 = vmatmul.mubr.msk.bf16.vlgmr.msra.gmra.mxu1 %vm803_vm3, %v1281_v39 }
 0x4d2   : > { %2417 = vmatpush3.bf16.msra.mxu1 %v1392_v40  ;;  %2418 = vmatprep.mubr.msk.bf16.mxu1 %vm2738_vm2, %v2737_v17 }
 0x4d3   : > { %2428 = vmatprep.subr.bf16.mxu1 %v2737_v17 }
 0x4d4   : > { %v3150_v41 = vpop.eup %2619 }
 0x4d5   : > { %v1262_v42 = vsel %vm803_vm3, %v3150_v41, 0.0 }
 0x4d6   : > { %1263 = vadd.xlane.f32.xlu1 %v1262_v42 }
 0x4dc   : > { %1578 = vrot.lane.b32.xlu0 %v3015_v54, %s2743_s21  ;;  %v1440_v54 = vsel %vm1294_vm4, %v1435_v44, 0 }
 0x4e7   : > { %1626 = vrot.lane.b32.xlu1 %v3023_v58, %s2743_s21 }
 0x516   : > { %v1249_v45 = vpop.xlane.xlu0 %1248 }
 0x517   : > { %2621 = vrcp.f32 %v1249_v45  ;;  %v1246_v48 = vpop.xlane.xlu1 %1245 }
 0x518   : > { %2623 = vrcp.f32 %v1246_v48 }
 0x51a   : > { %v1483_v55 = vpop.permute.xlu0 %1482 }
 0x51b   : > { %v1488_v61 = vsel %vm1294_vm4, %v1483_v55, 0  ;;  %v1531_v58 = vpop.permute.xlu1 %1530 }
 0x524   : > { %v2622_v49 = vpop.eup %2621 }
 0x525   : > { %v2624_v52 = vpop.eup %2623  ;;  %v1275_v53 = vmul.f32 %v2622_v49, %v3107_v10 }
 0x526   : > { %v1274_v57 = vmul.f32 %v2624_v52, %v3109_v11  ;;  %v1536_v11 = vsel %vm1294_vm4, %v1531_v58, 0 }
 0x527   : > { %v1283_v59 = vpack.c.bf16 %v1275_v53, %v1275_v53  ;;  %v2588_v53 = vld [vmem:[%s2920_s23] sm:$0xff]  }
 0x528   : > { %v1282_v60 = vpack.c.bf16 %v1274_v57, %v1274_v57 }
 0x529   : > { %2419 = vmatmul.mubr.msk.bf16.vlgmr.msra.gmra.mxu1 %vm803_vm3, %v1283_v59 }
 0x52a   : > { %2413 = vmatmul.mubr.msk.bf16.vlgmr.msra.gmra.mxu0 %vm803_vm3, %v1282_v60  ;;  %2429 = vmatpush3.bf16.msra.mxu1 %v1488_v61 }
 0x52b   : > { %2423 = vmatpush3.bf16.msra.mxu0 %v1440_v54  ;;  %2424 = vmatprep.mubr.msk.bf16.mxu0 %vm2738_vm2, %v2737_v17 }
 0x52c   : > { %2430 = vmatprep.mubr.msk.bf16.mxu1 %vm2738_vm2, %v2737_v17  ;;  %2434 = vmatprep.subr.bf16.mxu0 %v2737_v17 }
 0x52d   : > { %2440 = vmatprep.subr.bf16.mxu1 %v2737_v17 }
 0x54b   : > { %v1255_v62 = vpop.xlane.xlu0 %1254 }
 0x54c   : > { %2625 = vrcp.f32 %v1255_v62  ;;  %v1252_v63 = vpop.xlane.xlu1 %1251 }
 0x54d   : > { %2627 = vrcp.f32 %v1252_v63 }
 0x54f   : > { %v1261_v0 = vpop.xlane.xlu0 %1260 }
 0x550   : > { %2629 = vrcp.f32 %v1261_v0  ;;  %v1258_v46 = vpop.xlane.xlu1 %1257 }
 0x551   : > { %2631 = vrcp.f32 %v1258_v46 }
 0x553   : > { %v1579_v4 = vpop.permute.xlu0 %1578 }
 0x554   : > { %v1584_v10 = vsel %vm1294_vm4, %v1579_v4, 0 }
 0x559   : > { %v2626_v47 = vpop.eup %2625 }
 0x55a   : > { %v2628_v43 = vpop.eup %2627  ;;  %v1277_v1 = vmul.f32 %v2626_v47, %v3127_v56 }
 0x55b   : > { %v1276_v5 = vmul.f32 %v2628_v43, %v3129_v29 }
 0x55c   : > { %v1285_v6 = vpack.c.bf16 %v1277_v1, %v1277_v1 }
 0x55d   : > { %v2630_v7 = vpop.eup %2629  ;;  %v1284_v8 = vpack.c.bf16 %v1276_v5, %v1276_v5 }
 0x55e   : > { %v2632_v9 = vpop.eup %2631  ;;  %2431 = vmatmul.mubr.msk.bf16.vlgmr.msra.gmra.mxu1 %vm803_vm3, %v1285_v6  ;;  %v1279_v12 = vmul.f32 %v2630_v7, %v3133_v28 }
 0x55f   : > { %2425 = vmatmul.mubr.msk.bf16.vlgmr.msra.gmra.mxu0 %vm803_vm3, %v1284_v8  ;;  %2441 = vmatpush3.bf16.msra.mxu1 %v1584_v10  ;;  %v1264_v50 = vpop.xlane.xlu1 %1263  ;;  %v1278_v13 = vmul.f32 %v2632_v9, %v3137_v32 }
 0x560   : > { %2435 = vmatpush3.bf16.msra.mxu0 %v1536_v11  ;;  %2633 = vrcp.f32 %v1264_v50  ;;  %2436 = vmatprep.mubr.msk.bf16.mxu0 %vm2738_vm2, %v2737_v17  ;;  %v1287_v15 = vpack.c.bf16 %v1279_v12, %v1279_v12 }
 0x561   : > { %2442 = vmatprep.mubr.msk.bf16.mxu1 %vm2738_vm2, %v2737_v17  ;;  %2446 = vmatprep.subr.bf16.mxu0 %v2737_v17  ;;  %v1286_v18 = vpack.c.bf16 %v1278_v13, %v1278_v13  ;;  %v2269_v13 = vld [vmem:[%s3392_s27] ss:$0 sm:$0xff] }
 0x562   : > { %2452 = vmatprep.subr.bf16.mxu1 %v2737_v17 }
 0x563   : > { %v1627_v14 = vpop.permute.xlu1 %1626 }
 0x564   : > { %v1632_v16 = vsel %vm1294_vm4, %v1627_v14, 0 }
 0x566   : > { %2443 = vmatmul.mubr.msk.bf16.vlgmr.msra.gmra.mxu1 %vm803_vm3, %v1287_v15 }
 0x567   : > { %2437 = vmatmul.mubr.msk.bf16.vlgmr.msra.gmra.mxu0 %vm803_vm3, %v1286_v18  ;;  %2456 = vmatprep.mubr.msk.bf16.mxu1 %vm2738_vm2, %v2737_v17 }
 0x568   : > { %2447 = vmatpush3.bf16.msra.mxu0 %v1632_v16  ;;  %2448 = vmatprep.mubr.msk.bf16.mxu0 %vm2738_vm2, %v2737_v17 }
 0x569   : > { %2460 = vmatprep.subr.bf16.mxu0 %v2737_v17  ;;  %2453 = vmatpush3.bf16.msra.mxu1 %v2587_v34 }
 0x56a   : > { %2454 = vmatprep.subr.bf16.mxu1 %v2737_v17 }
 0x56d   : > { %v2634_v19 = vpop.eup %2633  ;;  %2455 = vmatpush3.bf16.msra.mxu1 %v2588_v53 }
 0x56e   : > { %v1280_v20 = vmul.f32 %v2634_v19, %v3150_v41  ;;  %2468 = vmatprep.subr.bf16.mxu1 %v2737_v17 }
 0x570   : > { %v1288_v21 = vpack.c.bf16 %v1280_v20, %v1280_v20 }
 0x572   : > { %2449 = vmatmul.mubr.msk.bf16.vlgmr.msra.gmra.mxu0 %vm803_vm3, %v1288_v21 }
 0x573   : > { %2464 = vmatprep.mubr.msk.bf16.mxu0 %vm2738_vm2, %v2737_v17 }
 0x591   : > { %v1332_v22 = vpop.f32.mrf.mxu1 }
 0x593   : > { %v2408_v23 = vpop.f32.mrf.mxu1 }
 0x595   : > { %v1335_v24 = vpop.f32.mrf.mxu1 }
 0x597   : > { %v2409_v25 = vpop.f32.mrf.mxu1 }
 0x5e9   : > { %v1428_v56 = vpop.f32.mrf.mxu1 }
 0x5ea   : > { %v1380_v26 = vpop.f32.mrf.mxu0 }
 0x5eb   : > { %v2420_v51 = vpop.f32.mrf.mxu1 }
 0x5ec   : > { %v2414_v29 = vpop.f32.mrf.mxu0 }
 0x5ed   : > { %v1431_v27 = vpop.f32.mrf.mxu1 }
 0x5ee   : > { %v1383_v28 = vpop.f32.mrf.mxu0 }
 0x5ef   : > { %v2421_v30 = vpop.f32.mrf.mxu1 }
 0x5f0   : > { %v2415_v31 = vpop.f32.mrf.mxu0 }
 0x5f1   : > { %v2589_v31 = vld [vmem:[%s2937_s17 + $0x8] sm:$0xff]  }
 0x5f2   : > { %2461 = vmatpush3.bf16.msra.mxu0 %v2589_v31 }
 0x5f3   : > { %2462 = vmatprep.subr.bf16.mxu0 %v2737_v17 }
 0x61e   : > { %v1524_v32 = vpop.f32.mrf.mxu1 }
 0x61f   : > { %v1476_v33 = vpop.f32.mrf.mxu0 }
 0x620   : > { %v2432_v35 = vpop.f32.mrf.mxu1 }
 0x621   : > { %v2426_v36 = vpop.f32.mrf.mxu0 }
 0x622   : > { %v1527_v37 = vpop.f32.mrf.mxu1 }
 0x623   : > { %v1479_v38 = vpop.f32.mrf.mxu0 }
 0x624   : > { %v2433_v39 = vpop.f32.mrf.mxu1 }
 0x625   : > { %v2427_v40 = vpop.f32.mrf.mxu0 }
 0x626   : > { %v1620_v41 = vpop.f32.mrf.mxu1 }
 0x627   : > { %v1572_v42 = vpop.f32.mrf.mxu0  ;;  %v2575_v44 = vpack.i.bf16 %v1620_v41, %v1428_v56 }
 0x628   : > { %v2570_v45 = vpack.i.bf16 %v1572_v42, %v1380_v26  ;;  %v2444_v48 = vpop.f32.mrf.mxu1 }
 0x629   : > { %v2438_v49 = vpop.f32.mrf.mxu0  ;;  %2576 = vrot.lane.b32.xlu1 %v2575_v44, %s2744_s20  ;;  %v2274_v48 = vld [vmem:[%s628_s0] ss:$0 sm:$0xff]  ;;  %s2037_s20 = sshll.u32 %s2953_s26, 4  ;;  %s3275_s20 = int_to_ptr.vmem [resolvable:$true] %s2037_s20 }
 0x62a   : > { %2571 = vrot.lane.b32.xlu0 %v2570_v45, %s2745_s3  ;;  %v1623_v52 = vpop.f32.mrf.mxu1  ;;  %s2643_s29 = scalar_lea.vmem %s3275_s20, 256 }
 0x62b   : > { %v1575_v55 = vpop.f32.mrf.mxu0  ;;  %p2644_p1 = scmp.ne.s32.totalorder %s3275_s20, %s2643_s29 }
 0x62c   : > { %v2445_v57 = vpop.f32.mrf.mxu1 }
 0x62d   : > { %v2439_v59 = vpop.f32.mrf.mxu0  ;;  %v2591_v57 = vld [vmem:[%s2951_s7 + $0x38] sm:$0xff]   ;;  %p2645_p2 = pnand %p2644_p1, %p2868_p3 }
 0x62e   : > { %v2592_v59 = vld [vmem:[%s2951_s7 + $0x30] sm:$0xff]  }
 0x62f   : > { %p2646_p4 = pneg %p2645_p2 }
 0x632   : > { %v1668_v60 = vpop.f32.mrf.mxu0 }
 0x633   : > { %v2580_v61 = vpack.i.bf16 %v1668_v60, %v1476_v33  ;;  %v2593_v60 = vld [vmem:[%s2951_s7 + $0x28] sm:$0xff]  }
 0x634   : > { %v2450_v54 = vpop.f32.mrf.mxu0 }
 0x635   : > { %2581 = vrot.lane.b32.xlu0 %v2580_v61, %s2746_s5  ;;  %v2594_v61 = vld [vmem:[%s2951_s7 + $0x20] sm:$0xff]   ;;  %v2595_v54 = vld [vmem:[%s2951_s7 + $0x18] sm:$0xff]  }
 0x636   : > { %v1671_v58 = vpop.f32.mrf.mxu0 }
 0x637   : > { %v2596_v58 = vld [vmem:[%s2951_s7 + $0x10] sm:$0xff]  }
 0x638   : > { %v2451_v62 = vpop.f32.mrf.mxu0 }
 0x639   : > { %v2597_v62 = vld [vmem:[%s2951_s7 + $0x8] sm:$0xff]  }
 0x69b   : > { %v2577_v0 = vpop.permute.xlu1 %2576 }
 0x69c   : > { %v2572_v63 = vpop.permute.xlu0 %2571  ;;  %v2579_v43 = vunpack.i.h.bf16 %v2577_v0  ;;  %v2578_v1 = vunpack.i.l.bf16 %v2577_v0  ;;  %v2275_v0 = vld [vmem:[%s636_s11] ss:$0 sm:$0xff] }
 0x69d   : > { %v2574_v46 = vunpack.i.h.bf16 %v2572_v63  ;;  %v2573_v47 = vunpack.i.l.bf16 %v2572_v63  ;;  %v2598_v63 = vld [vmem:[%s2951_s7] sm:$0xff]   ;;  %s3395_s7 = sld [smem:[#allocation9_spill]] }
 0x69f   : > { %v1699_v4 = vsel %vm803_vm3, %v1524_v32, %v2574_v46  ;;  %v1698_v5 = vsel %vm803_vm3, %v1332_v22, %v2573_v47  ;;  %v2590_v32 = vld [vmem:[%s2937_s17] sm:$0xff]   ;;  %s3394_s17 = scalar_lea.vmem %s3393_s16, %s2894_s30  ;;  %s3399_s30 = sand.u32 1, %s3396_s24  }
 0x6a0   : > { %v1701_v9 = vsel %vm1700_vm5, %v1698_v5, %v2578_v1  ;;  %v1702_v10 = vsel %vm1700_vm5, %v1699_v4, %v2579_v43  ;;  %2463 = vmatpush3.bf16.msra.mxu0 %v2590_v32  ;;  %v2273_v41 = vld [vmem:[%s3394_s17] ss:$0 sm:$0xff]  ;;  %s2647_s16 = sshll.u32 %s2747_s18, 4  ;;  %s2648_s16 = int_to_ptr.vmem [resolvable:$false] %s2647_s16 }
 0x6a1   : > { %s2649_s17 = scalar_lea.vmem %s2648_s16, 512  ;;  %p2650_p5 = scmp.lt.s32.totalorder %s3275_s20, %s2648_s16 }
 0x6a2   : > { %p2651_p6 = scmp.lt.s32.totalorder %s2649_s17, %s2643_s29 }
 0x6a3   : > { %s2297_s21 = sshll.u32 %s3395_s7, 8 }
 0x6a4   : > { %s3272_s27 = scalar_lea.hbm %s3398_s13, %s2297_s21  ;;  %p2652_p7 = por %p2651_p6, %p2650_p5 }
 0x6a6   : > { %p2653_p8 = pnand %p2652_p7, %p2646_p4 }
 0x6a7   : > { %v2582_v6 = vpop.permute.xlu0 %2581 }
 0x6a8   : > { %v2584_v7 = vunpack.i.h.bf16 %v2582_v6  ;;  %v2583_v8 = vunpack.i.l.bf16 %v2582_v6 }
 0x6aa   : > { %v1705_v11 = vsel %vm1703_vm6, %v1702_v10, %v2584_v7  ;;  %v1704_v50 = vsel %vm1703_vm6, %v1701_v9, %v2583_v8 }
 0x6ab   : > { %v1706_v12 = vpack.c.bf16 %v1705_v11, %v1704_v50 }
 0x6ad   : > { %2457 = vmatmul.mubr.msk.bf16.vlgmr.msra.gmra.mxu1 %vm660_vm1, %v1706_v12 }
 0x6ae   : > { %2484 = vmatprep.mubr.msk.bf16.mxu1 %vm2738_vm2, %v2737_v17  ;;  %2469 = vmatpush3.bf16.msra.mxu1 %v2591_v57 }
 0x6af   : > { %2470 = vmatprep.subr.bf16.mxu1 %v2737_v17 }
 0x6b2   : > { %2471 = vmatpush3.bf16.msra.mxu1 %v2592_v59 }
 0x6b3   : > { %2472 = vmatprep.subr.bf16.mxu1 %v2737_v17 }
 0x6b6   : > { %2473 = vmatpush3.bf16.msra.mxu1 %v2593_v60 }
 0x6b7   : > { %2474 = vmatprep.subr.bf16.mxu1 %v2737_v17 }
 0x6ba   : > { %2475 = vmatpush3.bf16.msra.mxu1 %v2594_v61 }
 0x6bb   : > { %2476 = vmatprep.subr.bf16.mxu1 %v2737_v17 }
 0x6be   : > { %2477 = vmatpush3.bf16.msra.mxu1 %v2595_v54 }
 0x6bf   : > { %2478 = vmatprep.subr.bf16.mxu1 %v2737_v17 }
 0x6c2   : > { %2479 = vmatpush3.bf16.msra.mxu1 %v2596_v58 }
 0x6c3   : > { %2480 = vmatprep.subr.bf16.mxu1 %v2737_v17 }
 0x6c6   : > { %2481 = vmatpush3.bf16.msra.mxu1 %v2597_v62 }
 0x6c7   : > { %2482 = vmatprep.subr.bf16.mxu1 %v2737_v17 }
 0x6ca   : > { %2483 = vmatpush3.bf16.msra.mxu1 %v2598_v63 }
 0x76d   : > { %v1767_v14 = vpop.f32.mrf.mxu1 }
 0x76e   : > { %v1768_v15 = vadd.f32 %v2269_v13, %v1767_v14 }
 0x76f   : > { %v2458_v16 = vpop.f32.mrf.mxu1 }
 0x770   : > { %v3212_v18 = vadd.f32 %v1768_v15, %v2959_v2 }
 0x771   : > { %v1770_v19 = vpop.f32.mrf.mxu1 }
 0x772   : > { %v1771_v20 = vadd.f32 %v2269_v13, %v1770_v19  ;;  %v1778_v21 = vsel %vm660_vm1, %v3212_v18, 0.0 }
 0x773   : > { %1779 = vadd.xlane.f32.xlu1 %v1778_v21  ;;  %v2459_v22 = vpop.f32.mrf.mxu1 }
 0x774   : > { %v3217_v23 = vadd.f32 %v1771_v20, %v2962_v3 }
 0x776   : > { %v1781_v24 = vsel %vm660_vm1, %v3217_v23, 0.0 }
 0x777   : > { %1782 = vadd.xlane.f32.xlu0 %v1781_v24 }
 0x7fc   : > { %v1780_v25 = vpop.xlane.xlu1 %1779 }
 0x7fd   : > { %v1784_v56 = vmul.f32 0.03125, %v1780_v25 }
 0x7ff   : > { %v1786_v2 = vsub.f32 %v3212_v18, %v1784_v56  ;;  %v2279_v56 = vld [vmem:[%s644_s25] ss:$0 sm:$0xff]  ;;  %s3281_s25 = scalar_lea.sflag [#allocation3], %s3399_s30 }
 0x800   : > { %v1783_v26 = vpop.xlane.xlu0 %1782 }
 0x801   : > { %v1785_v51 = vmul.f32 0.03125, %v1783_v26  ;;  %v1788_v29 = vmul.f32 %v1786_v2, %v1786_v2 }
 0x803   : > { %v1787_v27 = vsub.f32 %v3217_v23, %v1785_v51  ;;  %v1790_v28 = vsel %vm660_vm1, %v1788_v29, 0.0 }
 0x804   : > { %1791 = vadd.xlane.f32.xlu0 %v1790_v28 }
 0x805   : > { %v1789_v30 = vmul.f32 %v1787_v27, %v1787_v27 }
 0x807   : > { %v1793_v3 = vsel %vm660_vm1, %v1789_v30, 0.0 }
 0x808   : > { %1794 = vadd.xlane.f32.xlu0 %v1793_v3 }
 0x88d   : > { %v1792_v33 = vpop.xlane.xlu0 %1791 }
 0x88e   : > { %v1796_v34 = vmul.f32 0.03125, %v1792_v33 }
 0x890   : > { %v1798_v35 = vadd.f32 1e-05, %v1796_v34 }
 0x891   : > { %v1795_v36 = vpop.xlane.xlu0 %1794 }
 0x892   : > { %2635 = vrsqrt.f32 %v1798_v35  ;;  %v1797_v37 = vmul.f32 0.03125, %v1795_v36 }
 0x894   : > { %v1799_v38 = vadd.f32 1e-05, %v1797_v37 }
 0x896   : > { %2637 = vrsqrt.f32 %v1799_v38 }
 0x89f   : > { %v2636_v39 = vpop.eup %2635 }
 0x8a0   : > { %v1802_v40 = vmul.f32 %v2636_v39, %v1786_v2 }
 0x8a2   : > { %v1810_v45 = vmul.f32 %v2273_v41, %v1802_v40 }
 0x8a3   : > { %v2638_v42 = vpop.eup %2637 }
 0x8a4   : > { %v1803_v44 = vmul.f32 %v2638_v42, %v1787_v27  ;;  %v1818_v52 = vadd.f32 %v2274_v48, %v1810_v45 }
 0x8a6   : > { %v1811_v49 = vmul.f32 %v2273_v41, %v1803_v44 }
 0x8a8   : > { %v1819_v53 = vadd.f32 %v2274_v48, %v1811_v49 }
 0x8aa   : > { %v1820_v55 = vpack.c.bf16 %v1819_v53, %v1818_v52 }
 0x8ac   : > { %2465 = vmatmul.mubr.msk.bf16.vlgmr.msra.gmra.mxu0 %vm660_vm1, %v1820_v55 }
 0x96c   : > { %v1881_v46 = vpop.f32.mrf.mxu0 }
 0x96d   : > { %v1882_v47 = vadd.f32 %v2275_v0, %v1881_v46 }
 0x96e   : > { %v2466_v43 = vpop.f32.mrf.mxu0 }
 0x96f   : > { %v1890_v1 = vmul.f32 0.044715, %v1882_v47  ;;  %v1888_v19 = vmul.f32 0.5, %v1882_v47 }
 0x970   : > { %v1884_v4 = vpop.f32.mrf.mxu0 }
 0x971   : > { %v1892_v5 = vmul.f32 %v1890_v1, %v1882_v47  ;;  %v1885_v6 = vadd.f32 %v2275_v0, %v1884_v4 }
 0x972   : > { %v2467_v7 = vpop.f32.mrf.mxu0 }
 0x973   : > { %v1894_v8 = vmul.f32 %v1892_v5, %v1882_v47  ;;  %v1891_v9 = vmul.f32 0.044715, %v1885_v6  ;;  %v1889_v20 = vmul.f32 0.5, %v1885_v6 }
 0x975   : > { %v1896_v10 = vadd.f32 %v1894_v8, %v1882_v47  ;;  %v1893_v11 = vmul.f32 %v1891_v9, %v1885_v6 }
 0x977   : > { %v1898_v50 = vmul.f32 0.7978846, %v1896_v10  ;;  %v1895_v17 = vmul.f32 %v1893_v11, %v1885_v6 }
 0x979   : > { %2639 = vtanh.f32 %v1898_v50  ;;  %v1897_v12 = vadd.f32 %v1895_v17, %v1885_v6 }
 0x97b   : > { %v1899_v13 = vmul.f32 0.7978846, %v1897_v12 }
 0x97d   : > { %2641 = vtanh.f32 %v1899_v13 }
 0x986   : > { %v2640_v14 = vpop.eup %2639 }
 0x987   : > { %v1902_v15 = vadd.f32 1.0, %v2640_v14 }
 0x989   : > { %v1904_v22 = vmul.f32 %v1902_v15, %v1888_v19 }
 0x98a   : > { %v2642_v16 = vpop.eup %2641 }
 0x98b   : > { %v1903_v21 = vadd.f32 1.0, %v2642_v16 }
 0x98d   : > { %v1905_v24 = vmul.f32 %v1903_v21, %v1889_v20 }
 0x98f   : > { %v1906_v25 = vpack.c.bf16 %v1905_v24, %v1904_v22 }
 0x991   : > { %2485 = vmatmul.mubr.bf16.vlgmr.msra.gmra.mxu1 %v1906_v25 }
 0xa51   : > { %v2012_v2 = vpop.f32.mrf.mxu1 }
 0xa52   : > { %v2013_v26 = vadd.f32 %v2279_v56, %v2012_v2 }
 0xa53   : > { %v2486_v51 = vpop.f32.mrf.mxu1 }
 0xa54   : > { %v2019_v29 = vadd.f32 %v2013_v26, %v3212_v18 }
 0xa55   : > { %v2015_v27 = vpop.f32.mrf.mxu1 }
 0xa56   : > { %2021 = vst.msk [vmem:[%s2953_s26] sm:$0xff] %vm660_vm1, %v2019_v29  ;;  %v2016_v28 = vadd.f32 %v2279_v56, %v2015_v27 }
 0xa57   : > { %v2487_v30 = vpop.f32.mrf.mxu1 }
 0xa58   : > { %v2020_v3 = vadd.f32 %v2016_v28, %v3217_v23 }
 0xa5a   : > { %2022 = vst.msk [vmem:[%s2953_s26 + $0x8] sm:$0xff] %vm660_vm1, %v2020_v3 }
 0xa5b   : > { %2656 = shalt.err (!%p2653_p8)
}
 0xa5c   : > { %s2657_s26 = scalar_lea.hbm %s3272_s27, 256  ;;  %s2661_s0 = scalar_lea.hbm %s3398_s13, 512 }
 0xa5d   : > { %p2658_p10 = scmp.ne.s32.totalorder %s3272_s27, %s2657_s26  ;;  %p2662_p13 = scmp.lt.s32.totalorder %s3272_s27, %s3398_s13 }
 0xa5e   : > { %p2663_p0 = scmp.lt.s32.totalorder %s2661_s0, %s2657_s26 }
 0xa5f   : > { %p2659_p11 = pnand %p2658_p10, %p2868_p3 }
 0xa60   : > { %p2664_p1 = por %p2663_p0, %p2662_p13 }
 0xa61   : > { %p2660_p12 = pneg %p2659_p11 }
 0xa63   : > { %p2665_p2 = pnand %p2664_p1, %p2660_p12 }
 0xa65   : > { %2668 = shalt.err (!%p2665_p2)
}
 0xa66   : > { %s2748_s11 = smov 128  }
 0xa67   : > { %2488 = dma.vmem_to_hbm [thread:$0]  (%p2868_p3), %s3275_s20, 256, %s3272_s27, %s3281_s25, %s2748_s11, %s2748_s11, %s2745_s3  }
 0xa68 PF: > { %s3400_s14 = sld [smem:[#allocation12_spill]] }
 0xa69   : > { %s3401_s24 = sld [smem:[#allocation5_spill]] }
 0xa6e   : > { %p2494_p4 = scmp.ge.s32.totalorder %s3400_s14, 2 }
 0xa6f   : > { %s2052_s5 = sand.u32 1, %s3401_s24  }
 0xa70   : > { %p2491_p5 = pnand %p2494_p4, %p2878_p9  ;;  %s2053_s23 = scalar_lea.sflag [#allocation3], %s2052_s5 }
 0xa72   : > { %p2492_p6 = pneg %p2491_p5 }
 0xa74   : > { %2702 = dma.done.wait (%p2492_p6), %s2053_s23, 256  }
 0xa75   : > { %2704 = vsyncadd (%p2492_p6), %s2053_s23, 4294967040  ;;  %s26_s15 = sadd.s32 1, %s3400_s14   ;;  %s3403_s25 = sld [smem:[#allocation6_spill]] }
 0xa76   : > { %p23_p7 = scmp.ge.s32.totalorder %s26_s15, 6   ;;  %s3404_s26 = sld [smem:[#allocation7_spill]] }
 0xa77   : > { %s3405_s27 = sld [smem:[#allocation17_spill]] }
 0xa78   : > { %s3406_s28 = sld [smem:[#allocation10_spill]]  ;;  %25 = sbr.rel (!%p23_p7) target bundleno = 12 (0xc), region = 147 }
 0xa79   : > { %s3407_s29 = sld [smem:[#allocation11_spill]] }
 0xa7a   : > { %s3408_s30 = sld [smem:[#allocation13_spill]] }
 0xa7b   : > { %s3409_s14 = sld [smem:[#allocation15_spill]] }
 0xa7d   :  { %2058 = vsyncpa [#allocation3], 1 }
 0xa7e   :  { %2060 = vsyncpa [#allocation3 + $0x1], 1 }

</bundles_post_ra>
